<compile_context>
chip_gen: v6e
topology: v6e:2x2x1
jax: 0.10.0
libtpu: 0.0.40
codegen_flags: <defaults>
</compile_context>

<pallas_src>
import math
import functools

import jax
import jax.numpy as jnp
from jax.experimental import pallas as pl
from jax.experimental.pallas import tpu as pltpu

SINGULAR_FEATURES = ("asr_sentiment", "ocr_sentiment")


# ----------------------------------------------------------------------------
# Block-size helpers
# ----------------------------------------------------------------------------
def _pick_block(dim, target, align):
    """Full dim if small, else the largest `align`-multiple divisor <= target."""
    if dim <= target:
        return dim
    cand = target - (target % align)
    while cand >= align:
        if dim % cand == 0:
            return cand
        cand -= align
    return dim  # fall back to full extent (always legal)


def _maybe_split_rows(M, tm):
    """Prefer >= 2 grid steps along M so a v7x chip can use both TensorCores."""
    if tm == M and M >= 16:
        half = _pick_block(M, M // 2, 8)
        if half < M and M % half == 0:
            return half
    return tm


# ----------------------------------------------------------------------------
# Sinusoidal PE table (learned=False path of PositionalEncoding.__init__)
# ----------------------------------------------------------------------------
def make_sinusoidal_pe(max_len, d_model):
    position = jnp.arange(max_len, dtype=jnp.float32)[:, None]
    div_term = jnp.exp(jnp.arange(0, d_model, 2, dtype=jnp.float32)
                       * (-math.log(10000.0) / d_model))
    pe = jnp.zeros((max_len, d_model), dtype=jnp.float32)
    pe = pe.at[:, 0::2].set(jnp.sin(position * div_term))
    pe = pe.at[:, 1::2].set(jnp.cos(position * div_term))
    return pe[:, None, :]  # (L, 1, D)


# ----------------------------------------------------------------------------
# Kernel 1: generic tiled linear  y = act(x @ w + b)   (feature encoders, decoder)
# ----------------------------------------------------------------------------
def _linear_kernel(x_ref, w_ref, b_ref, o_ref, acc_ref, *, activation):
    k = pl.program_id(2)

    @pl.when(k == 0)
    def _init():
        acc_ref[...] = jnp.zeros_like(acc_ref)

    # Native-dtype MXU inputs; f32 accumulation via preferred_element_type.
    acc_ref[...] += jnp.dot(x_ref[...], w_ref[...],
                            preferred_element_type=jnp.float32)

    @pl.when(k == pl.num_programs(2) - 1)
    def _finalize():
        y = acc_ref[...] + b_ref[...].astype(jnp.float32)
        if activation == "relu":
            y = jnp.maximum(y, 0.0)
        o_ref[...] = y.astype(o_ref.dtype)


def linear(x, w, b, *, activation=None):
    M, K = x.shape
    Kw, N = w.shape
    assert K == Kw
    # Larger tile targets (v5e/v6e feedback); demo sizes collapse to full-array
    # blocks. Double-buffered working set at 512/512/1024 f32 is ~11 MiB, well
    # under the ~24 MiB budget that is safe on v7x (64 MiB physical VMEM).
    tm = _pick_block(M, 512, 8)
    tn = _pick_block(N, 512, 128)
    tk = _pick_block(K, 1024, 128)
    if (M // tm) * (N // tn) == 1:
        tm = _maybe_split_rows(M, tm)
    kernel = functools.partial(_linear_kernel, activation=activation)
    return pl.pallas_call(
        kernel,
        out_shape=jax.ShapeDtypeStruct((M, N), x.dtype),
        grid=(M // tm, N // tn, K // tk),
        in_specs=[
            pl.BlockSpec((tm, tk), lambda i, j, k: (i, k)),
            pl.BlockSpec((tk, tn), lambda i, j, k: (k, j)),
            pl.BlockSpec((1, tn), lambda i, j, k: (0, j)),
        ],
        out_specs=pl.BlockSpec((tm, tn), lambda i, j, k: (i, j)),
        scratch_shapes=[pltpu.VMEM((tm, tn), jnp.float32)],
        compiler_params=pltpu.CompilerParams(
            dimension_semantics=("parallel", "parallel", "arbitrary"),
            vmem_limit_bytes=32 << 20),
    )(x, w, b.reshape(1, N))


# ----------------------------------------------------------------------------
# Kernel 2: fully fused Transformer (PE + dropout + n_layers encoder + final LN)
# ----------------------------------------------------------------------------
def _layernorm_math(x, g, b, eps):
    mu = jnp.mean(x, axis=-1, keepdims=True)
    xc = x - mu
    var = jnp.mean(xc * xc, axis=-1, keepdims=True)
    return xc * jax.lax.rsqrt(var + eps) * g + b


def _fused_transformer_kernel(seed_ref, x_ref, pe_ref, *rest,
                              n_layers, n_heads, p, training, eps):
    """One batch element per grid step; everything stays in VMEM / vregs."""
    o_ref = rest[-1]
    norm_g_ref, norm_b_ref = rest[-3], rest[-2]
    layer_refs = rest[: 16 * n_layers]

    S, D = pe_ref.shape
    dh = D // n_heads
    scale = 1.0 / math.sqrt(dh)

    # Positional encoding: pe is a single (S, D) block shared by every batch
    # element (no (S, B*D) tiled table in HBM).
    x = x_ref[...] + pe_ref[...]                                     # (S, D)

    if training and p > 0.0:
        # TODO(synk): PyTorch's dropout RNG stream cannot be reproduced
        # bit-exactly; use a stateless hash of the global (seq, batch, dim)
        # index so the mask is deterministic and tiling-independent.
        b_idx = pl.program_id(0)
        n_b = pl.num_programs(0)
        r = jax.lax.broadcasted_iota(jnp.int32, (S, D), 0)
        c = jax.lax.broadcasted_iota(jnp.int32, (S, D), 1)
        idx = (r * n_b + b_idx) * D + c
        h = idx.astype(jnp.uint32) ^ seed_ref[0].astype(jnp.uint32)
        h = h * jnp.uint32(0x9E3779B1)
        h = h ^ (h >> 15)
        h = h * jnp.uint32(0x85EBCA77)
        h = h ^ (h >> 13)
        h = h * jnp.uint32(0xC2B2AE3D)
        h = h ^ (h >> 16)
        thr = jnp.uint32(min(int(round(float(p) * 4294967296.0)), 4294967295))
        x = jnp.where(h >= thr, x * (1.0 / (1.0 - p)), 0.0)

    for li in range(n_layers):
        (w_q, b_q, w_k, b_k, w_v, b_v, w_o, b_o,
         ln1_g, ln1_b, w_ff1, b_ff1, w_ff2, b_ff2,
         ln2_g, ln2_b) = layer_refs[16 * li: 16 * (li + 1)]

        # ---- multi-head self-attention (per-head weights: no lane slicing) ---
        attn = None
        for hd in range(n_heads):
            q = jnp.dot(x, w_q[hd], preferred_element_type=jnp.float32) + b_q[hd]
            k = jnp.dot(x, w_k[hd], preferred_element_type=jnp.float32) + b_k[hd]
            v = jnp.dot(x, w_v[hd], preferred_element_type=jnp.float32) + b_v[hd]
            s = jax.lax.dot_general(q * scale, k, (((1,), (1,)), ((), ())),
                                    preferred_element_type=jnp.float32)  # (S, S)
            s = s - jnp.max(s, axis=-1, keepdims=True)
            e = jnp.exp(s)
            # TODO(synk): pl.reciprocal(..., approx=True) would move this divide
            # to the EUP; kept exact to stay numerically tight vs PyTorch softmax.
            pm = e / jnp.sum(e, axis=-1, keepdims=True)
            oh = jnp.dot(pm, v, preferred_element_type=jnp.float32)     # (S, dh)
            # concat(heads) @ W_out == sum_h head_h @ W_out[h-th row block]
            contrib = jnp.dot(oh, w_o[hd], preferred_element_type=jnp.float32)
            attn = contrib if attn is None else attn + contrib
        attn = attn + b_o[...]

        # ---- add & norm (fused epilogue) -------------------------------------
        x = _layernorm_math(x + attn, ln1_g[...], ln1_b[...], eps)

        # ---- feed-forward + add & norm ---------------------------------------
        # TODO(synk): attention/FFN/residual dropout omitted (eval-mode forward,
        # matching module.eval()); PE dropout above shows the in-kernel pattern.
        ff = jnp.dot(x, w_ff1[...], preferred_element_type=jnp.float32) + b_ff1[...]
        ff = jnp.maximum(ff, 0.0)
        ff = jnp.dot(ff, w_ff2[...], preferred_element_type=jnp.float32) + b_ff2[...]
        x = _layernorm_math(x + ff, ln2_g[...], ln2_b[...], eps)

    # final TransformerEncoder norm
    x = _layernorm_math(x, norm_g_ref[...], norm_b_ref[...], eps)
    # NOTE: D=32 lanes only — production should pad d_model to a multiple of 128.
    o_ref[...] = x.astype(o_ref.dtype)


def _prep_layer_tensors(lp, n_heads):
    """Reshape a layer's PyTorch-style weights into per-head VMEM-friendly slabs."""
    D = lp["w_out"].shape[0]
    dh = D // n_heads
    w_in, b_in = lp["w_in"], lp["b_in"]               # (D, 3D), (3D,)

    def per_head_w(w):                                # (D, D) -> (H, D, dh)
        return jnp.transpose(w.reshape(D, n_heads, dh), (1, 0, 2))

    def per_head_b(b):                                # (D,) -> (H, 1, dh)
        return b.reshape(n_heads, 1, dh)

    return [
        per_head_w(w_in[:, :D]),        per_head_b(b_in[:D]),
        per_head_w(w_in[:, D:2 * D]),   per_head_b(b_in[D:2 * D]),
        per_head_w(w_in[:, 2 * D:]),    per_head_b(b_in[2 * D:]),
        lp["w_out"].reshape(n_heads, dh, D), lp["b_out"].reshape(1, D),
        lp["ln1_g"].reshape(1, D), lp["ln1_b"].reshape(1, D),
        lp["w_ff1"], lp["b_ff1"].reshape(1, -1),
        lp["w_ff2"], lp["b_ff2"].reshape(1, D),
        lp["ln2_g"].reshape(1, D), lp["ln2_b"].reshape(1, D),
    ]


def _const_index_map(ndim):
    if ndim == 2:
        return lambda b, seed_ref: (0, 0)
    return lambda b, seed_ref: (0, 0, 0)


def transformer_forward(x, tp, n_heads, *, dropout_p=0.0, training=False, seed=0):
    """Fused Transformer forward. x: (B, S, D) batch-major. Returns (B, S, D)."""
    B, S, D = x.shape
    n_layers = len(tp["layers"])
    pe = tp["pe"][:S, 0, :].astype(x.dtype)            # (S, D) single block

    tensors = [x, pe]
    specs = [
        pl.BlockSpec((None, S, D), lambda b, seed_ref: (b, 0, 0)),
        pl.BlockSpec((S, D), lambda b, seed_ref: (0, 0)),
    ]
    for lp in tp["layers"]:
        for t in _prep_layer_tensors(lp, n_heads):
            tensors.append(t)
            specs.append(pl.BlockSpec(t.shape, _const_index_map(t.ndim)))
    for t in (tp["norm_g"].reshape(1, D), tp["norm_b"].reshape(1, D)):
        tensors.append(t)
        specs.append(pl.BlockSpec(t.shape, _const_index_map(2)))

    kernel = functools.partial(
        _fused_transformer_kernel, n_layers=n_layers, n_heads=n_heads,
        p=float(dropout_p), training=bool(training), eps=1e-5)

    seed_arr = jnp.array([seed], dtype=jnp.int32)
    return pl.pallas_call(
        kernel,
        out_shape=jax.ShapeDtypeStruct((B, S, D), x.dtype),
        grid_spec=pltpu.PrefetchScalarGridSpec(
            num_scalar_prefetch=1,                     # seed lives in SMEM
            grid=(B,),
            in_specs=specs,
            out_specs=pl.BlockSpec((None, S, D), lambda b, seed_ref: (b, 0, 0)),
        ),
        # Independent batch elements -> both v7x TensorCores can be used.
        compiler_params=pltpu.CompilerParams(dimension_semantics=("parallel",)),
    )(seed_arr, *tensors)


# ----------------------------------------------------------------------------
# MultiTransformer forward (batch-major; mathematically identical to PyTorch's
# (S, B, D) layout, avoids the transpose glue ops)
# ----------------------------------------------------------------------------
def multitransformer_forward(inputs, params, *, n_heads, d_model,
                             dropout_p=0.0, training=False, seed=0):
    outs = {}
    for fi, name in enumerate(inputs):
        x = inputs[name]                               # (B, L, dim)
        B, L, dim = x.shape
        if d_model > 0:
            enc = params["encoders"][name]
            x = linear(x.reshape(B * L, dim), enc["w"], enc["b"]).reshape(B, L, d_model)
        if name not in SINGULAR_FEATURES:
            d = x.shape[-1]
            cls = jnp.broadcast_to(params["cls"][name].reshape(1, 1, d), (B, 1, d))
            x = jnp.concatenate([cls, x], axis=1)      # (B, L+1, d)
            x = transformer_forward(x, params["transformers"][name], n_heads,
                                    dropout_p=dropout_p, training=training,
                                    seed=seed + fi)    # de-correlate per-feature masks
        outs[name] = x[:, 0, :]
    cat = jnp.concatenate([outs[k] for k in sorted(outs)], axis=-1)
    dec = params["decoder"]
    return linear(cat, dec["w"], dec["b"])


# ----------------------------------------------------------------------------
# Parameter init (random, deterministic; mirrors the PyTorch module structure)
# ----------------------------------------------------------------------------
def init_transformer_params(key, d, n_layers, n_heads, max_len, learned_position=True):
    keys = jax.random.split(key, 2 + n_layers)
    if learned_position:
        pe = jax.random.normal(keys[0], (max_len, 1, d), jnp.float32) * 0.02
    else:
        pe = make_sinusoidal_pe(max_len, d)
    p = {"pe": pe,
         "norm_g": jnp.ones((d,), jnp.float32),
         "norm_b": jnp.zeros((d,), jnp.float32),
         "layers": []}
    d_ff = 4 * d
    for li in range(n_layers):
        k = jax.random.split(keys[2 + li], 4)
        p["layers"].append({
            "w_in": jax.random.normal(k[0], (d, 3 * d), jnp.float32) * 0.05,
            "b_in": jnp.zeros((3 * d,), jnp.float32),
            "w_out": jax.random.normal(k[1], (d, d), jnp.float32) * 0.05,
            "b_out": jnp.zeros((d,), jnp.float32),
            "w_ff1": jax.random.normal(k[2], (d, d_ff), jnp.float32) * 0.05,
            "b_ff1": jnp.zeros((d_ff,), jnp.float32),
            "w_ff2": jax.random.normal(k[3], (d_ff, d), jnp.float32) * 0.05,
            "b_ff2": jnp.zeros((d,), jnp.float32),
            "ln1_g": jnp.ones((d,), jnp.float32), "ln1_b": jnp.zeros((d,), jnp.float32),
            "ln2_g": jnp.ones((d,), jnp.float32), "ln2_b": jnp.zeros((d,), jnp.float32),
        })
    return p


def init_multitransformer_params(key, feature_lengths, feature_dims,
                                 n_layers, n_heads, d_output, d_model,
                                 learned_position=True):
    params = {"encoders": {}, "transformers": {}, "cls": {}}
    d_dec_in = 0
    for name in sorted(feature_dims):
        dim = feature_dims[name]
        if d_model > 0:
            d = d_model
            key, kw = jax.random.split(key)
            params["encoders"][name] = {
                "w": jax.random.normal(kw, (dim, d), jnp.float32) * 0.05,
                "b": jnp.zeros((d,), jnp.float32),
            }
        else:
            d = dim
        d_dec_in += d
        if name not in SINGULAR_FEATURES:
            max_len = feature_lengths[name] + 1
            key, kc, kt = jax.random.split(key, 3)
            params["cls"][name] = jax.random.uniform(kc, (1, 1, d), jnp.float32)
            params["transformers"][name] = init_transformer_params(
                kt, d, n_layers, n_heads, max_len, learned_position)
    key, kw = jax.random.split(key)
    params["decoder"] = {"w": jax.random.normal(kw, (d_dec_in, d_output), jnp.float32) * 0.05,
                         "b": jnp.zeros((d_output,), jnp.float32)}
    return params


# ----------------------------------------------------------------------------
# Pure-JAX reference (same params, eval mode) for numerical validation
# ----------------------------------------------------------------------------
def _ref_linear(x, w, b, activation=None):
    y = x @ w + b
    return jnp.maximum(y, 0.0) if activation == "relu" else y


def _ref_layernorm(x, g, b, eps=1e-5):
    mu = jnp.mean(x, -1, keepdims=True)
    xc = x - mu
    var = jnp.mean(xc * xc, -1, keepdims=True)
    return xc * jax.lax.rsqrt(var + eps) * g + b


def _ref_attention(q, k, v, scale):
    s = jnp.einsum("bqd,bkd->bqk", q * scale, k)
    s = s - jnp.max(s, -1, keepdims=True)
    p = jnp.exp(s)
    p = p / jnp.sum(p, -1, keepdims=True)
    return jnp.einsum("bqk,bkd->bqd", p, v)


def _ref_encoder_layer(x, lp, n_heads):
    S, B, D = x.shape
    dh = D // n_heads
    x2 = x.reshape(S * B, D)
    qkv = _ref_linear(x2, lp["w_in"], lp["b_in"])
    q, k, v = jnp.split(qkv, 3, axis=-1)

    def to_heads(t):
        return t.reshape(S, B, n_heads, dh).transpose(1, 2, 0, 3).reshape(B * n_heads, S, dh)

    oh = _ref_attention(to_heads(q), to_heads(k), to_heads(v), 1.0 / math.sqrt(dh))
    o = oh.reshape(B, n_heads, S, dh).transpose(2, 0, 1, 3).reshape(S * B, D)
    o = _ref_linear(o, lp["w_out"], lp["b_out"])
    h = _ref_layernorm(x2 + o, lp["ln1_g"], lp["ln1_b"])
    ff = _ref_linear(h, lp["w_ff1"], lp["b_ff1"], "relu")
    ff = _ref_linear(ff, lp["w_ff2"], lp["b_ff2"])
    h2 = _ref_layernorm(h + ff, lp["ln2_g"], lp["ln2_b"])
    return h2.reshape(S, B, D)


def _ref_transformer(x, tp, n_heads):
    x = x + tp["pe"][: x.shape[0]]
    for lp in tp["layers"]:
        x = _ref_encoder_layer(x, lp, n_heads)
    S, B, D = x.shape
    return _ref_layernorm(x.reshape(S * B, D), tp["norm_g"], tp["norm_b"]).reshape(S, B, D)


def multitransformer_reference(inputs, params, *, n_heads, d_model):
    outs = {}
    for name, feat in inputs.items():
        x = jnp.transpose(feat, (1, 0, 2))
        L, B, _ = x.shape
        if d_model > 0:
            enc = params["encoders"][name]
            x = _ref_linear(x.reshape(L * B, x.shape[-1]), enc["w"], enc["b"]).reshape(L, B, d_model)
        if name not in SINGULAR_FEATURES:
            cls = jnp.broadcast_to(params["cls"][name], (1, B, x.shape[-1]))
            x = jnp.concatenate([cls, x], axis=0)
            x = _ref_transformer(x, params["transformers"][name], n_heads)
        outs[name] = x[0, :, :]
    cat = jnp.concatenate([outs[k] for k in sorted(outs)], axis=-1)
    dec = params["decoder"]
    return _ref_linear(cat, dec["w"], dec["b"])


# ----------------------------------------------------------------------------
# Demo / self-check
# ----------------------------------------------------------------------------
if __name__ == "__main__":
    root = jax.random.PRNGKey(0)
    k_par, k_vid, k_aud, k_asr, k_tx = jax.random.split(root, 5)

    feature_lengths = {"video": 8, "audio": 6, "asr_sentiment": 1}
    feature_dims = {"video": 12, "audio": 10, "asr_sentiment": 4}
    n_layers, n_heads, d_output, d_model = 1, 2, 4, 32
    dropout_p, batch = 0.1, 2

    params = init_multitransformer_params(
        k_par, feature_lengths, feature_dims, n_layers, n_heads, d_output, d_model)

    inputs = {
        "video": jax.random.normal(
            k_vid, (batch, feature_lengths["video"], feature_dims["video"]), jnp.float32),
        "audio": jax.random.normal(
            k_aud, (batch, feature_lengths["audio"], feature_dims["audio"]), jnp.float32),
        "asr_sentiment": jax.random.normal(
            k_asr, (batch, feature_lengths["asr_sentiment"], feature_dims["asr_sentiment"]),
            jnp.float32),
    }

    # ---- 1) Fused transformer kernel vs pure-JAX reference (eval mode) ------
    tpar = params["transformers"]["video"]
    S_t = feature_lengths["video"] + 1
    x_t = jax.random.normal(k_tx, (batch, S_t, d_model), jnp.float32)
    y_fused = jax.block_until_ready(transformer_forward(x_t, tpar, n_heads))
    y_ref = jnp.transpose(
        _ref_transformer(jnp.transpose(x_t, (1, 0, 2)), tpar, n_heads), (1, 0, 2))
    assert y_fused.shape == (batch, S_t, d_model)
    assert jnp.allclose(y_fused, y_ref, atol=1e-3, rtol=1e-3), "fused transformer mismatch"

    # ---- 2) In-kernel dropout smoke test (deterministic, actually drops) ----
    y_tr_a = jax.block_until_ready(transformer_forward(
        x_t, tpar, n_heads, dropout_p=dropout_p, training=True, seed=123))
    y_tr_b = jax.block_until_ready(transformer_forward(
        x_t, tpar, n_heads, dropout_p=dropout_p, training=True, seed=123))
    assert jnp.array_equal(y_tr_a, y_tr_b), "training dropout must be deterministic per seed"
    assert bool(jnp.all(jnp.isfinite(y_tr_a)))
    assert not bool(jnp.allclose(y_tr_a, y_fused, atol=1e-6)), "dropout had no effect"

    # ---- 3) Full MultiTransformer forward (eval) vs pure-JAX reference ------
    out = jax.block_until_ready(
        multitransformer_forward(inputs, params, n_heads=n_heads, d_model=d_model))
    ref = multitransformer_reference(inputs, params, n_heads=n_heads, d_model=d_model)
    assert out.shape == (batch, d_output)
    assert bool(jnp.all(jnp.isfinite(out)))
    assert jnp.allclose(out, ref, atol=1e-3, rtol=1e-3), "MultiTransformer mismatch vs reference"

    print("KERNEL_OK")
</pallas_src>

<mosaic_0001>
module attributes {stable_mosaic.version = 11 : i64} {
  func.func @_fused_transformer_kernel(%arg0: i32, %arg1: memref<1xi32, #tpu.memory_space<smem>>, %arg2: memref<1x9x32xf32, #tpu.memory_space<vmem>>, %arg3: memref<9x32xf32, #tpu.memory_space<vmem>>, %arg4: memref<2x32x16xf32, #tpu.memory_space<vmem>>, %arg5: memref<2x1x16xf32, #tpu.memory_space<vmem>>, %arg6: memref<2x32x16xf32, #tpu.memory_space<vmem>>, %arg7: memref<2x1x16xf32, #tpu.memory_space<vmem>>, %arg8: memref<2x32x16xf32, #tpu.memory_space<vmem>>, %arg9: memref<2x1x16xf32, #tpu.memory_space<vmem>>, %arg10: memref<2x16x32xf32, #tpu.memory_space<vmem>>, %arg11: memref<1x32xf32, #tpu.memory_space<vmem>>, %arg12: memref<1x32xf32, #tpu.memory_space<vmem>>, %arg13: memref<1x32xf32, #tpu.memory_space<vmem>>, %arg14: memref<32x128xf32, #tpu.memory_space<vmem>>, %arg15: memref<1x128xf32, #tpu.memory_space<vmem>>, %arg16: memref<128x32xf32, #tpu.memory_space<vmem>>, %arg17: memref<1x32xf32, #tpu.memory_space<vmem>>, %arg18: memref<1x32xf32, #tpu.memory_space<vmem>>, %arg19: memref<1x32xf32, #tpu.memory_space<vmem>>, %arg20: memref<1x32xf32, #tpu.memory_space<vmem>>, %arg21: memref<1x32xf32, #tpu.memory_space<vmem>>, %arg22: memref<1x9x32xf32, #tpu.memory_space<vmem>>) attributes {dimension_semantics = [#tpu.dimension_semantics<parallel>], iteration_bounds = array<i64: 2>, scalar_prefetch = 1 : i64, scratch_operands = 0 : i64, tpu.core_type = #tpu.core_type<tc>, window_params = [{transform_indices = @transform_0, window_bounds = array<i64: 1, 9, 32>}, {pipeline_mode = #tpu.pipeline_mode<synchronous>, transform_indices = @transform_1, window_bounds = array<i64: 9, 32>}, {pipeline_mode = #tpu.pipeline_mode<synchronous>, transform_indices = @transform_2, window_bounds = array<i64: 2, 32, 16>}, {pipeline_mode = #tpu.pipeline_mode<synchronous>, transform_indices = @transform_3, window_bounds = array<i64: 2, 1, 16>}, {pipeline_mode = #tpu.pipeline_mode<synchronous>, transform_indices = @transform_4, window_bounds = array<i64: 2, 32, 16>}, {pipeline_mode = #tpu.pipeline_mode<synchronous>, transform_indices = @transform_5, window_bounds = array<i64: 2, 1, 16>}, {pipeline_mode = #tpu.pipeline_mode<synchronous>, transform_indices = @transform_6, window_bounds = array<i64: 2, 32, 16>}, {pipeline_mode = #tpu.pipeline_mode<synchronous>, transform_indices = @transform_7, window_bounds = array<i64: 2, 1, 16>}, {pipeline_mode = #tpu.pipeline_mode<synchronous>, transform_indices = @transform_8, window_bounds = array<i64: 2, 16, 32>}, {pipeline_mode = #tpu.pipeline_mode<synchronous>, transform_indices = @transform_9, window_bounds = array<i64: 1, 32>}, {pipeline_mode = #tpu.pipeline_mode<synchronous>, transform_indices = @transform_10, window_bounds = array<i64: 1, 32>}, {pipeline_mode = #tpu.pipeline_mode<synchronous>, transform_indices = @transform_11, window_bounds = array<i64: 1, 32>}, {pipeline_mode = #tpu.pipeline_mode<synchronous>, transform_indices = @transform_12, window_bounds = array<i64: 32, 128>}, {pipeline_mode = #tpu.pipeline_mode<synchronous>, transform_indices = @transform_13, window_bounds = array<i64: 1, 128>}, {pipeline_mode = #tpu.pipeline_mode<synchronous>, transform_indices = @transform_14, window_bounds = array<i64: 128, 32>}, {pipeline_mode = #tpu.pipeline_mode<synchronous>, transform_indices = @transform_15, window_bounds = array<i64: 1, 32>}, {pipeline_mode = #tpu.pipeline_mode<synchronous>, transform_indices = @transform_16, window_bounds = array<i64: 1, 32>}, {pipeline_mode = #tpu.pipeline_mode<synchronous>, transform_indices = @transform_17, window_bounds = array<i64: 1, 32>}, {pipeline_mode = #tpu.pipeline_mode<synchronous>, transform_indices = @transform_18, window_bounds = array<i64: 1, 32>}, {pipeline_mode = #tpu.pipeline_mode<synchronous>, transform_indices = @transform_19, window_bounds = array<i64: 1, 32>}, {transform_indices = @transform_20, window_bounds = array<i64: 1, 9, 32>}]} {
    %c0 = arith.constant 0 : index
    %c0_0 = arith.constant 0 : index
    %c0_1 = arith.constant 0 : index
    %0 = vector.load %arg2[%c0, %c0_0, %c0_1] : memref<1x9x32xf32, #tpu.memory_space<vmem>>, vector<1x9x32xf32>
    %1 = vector.shape_cast %0 : vector<1x9x32xf32> to vector<9x32xf32>
    %c0_2 = arith.constant 0 : index
    %c0_3 = arith.constant 0 : index
    %2 = vector.load %arg3[%c0_2, %c0_3] : memref<9x32xf32, #tpu.memory_space<vmem>>, vector<9x32xf32>
    %3 = arith.addf %1, %2 : vector<9x32xf32>
    %c0_4 = arith.constant 0 : index
    %c0_5 = arith.constant 0 : index
    %c0_6 = arith.constant 0 : index
    %4 = vector.load %arg4[%c0_4, %c0_5, %c0_6] : memref<2x32x16xf32, #tpu.memory_space<vmem>>, vector<1x32x16xf32>
    %5 = vector.shape_cast %4 : vector<1x32x16xf32> to vector<32x16xf32>
    %cst = arith.constant dense<0.000000e+00> : vector<9x16xf32>
    %6 = tpu.matmul %3, %5, %cst {dimension_numbers = #tpu.dot_dimension_numbers<[1], [0], [0], [1], [0, 0, 1, 1], [], []>} : vector<9x32xf32>, vector<32x16xf32>, vector<9x16xf32> -> vector<9x16xf32>
    %c0_7 = arith.constant 0 : index
    %c0_8 = arith.constant 0 : index
    %c0_9 = arith.constant 0 : index
    %7 = vector.load %arg5[%c0_7, %c0_8, %c0_9] : memref<2x1x16xf32, #tpu.memory_space<vmem>>, vector<1x1x16xf32>
    %8 = vector.shape_cast %7 : vector<1x1x16xf32> to vector<1x16xf32>
    %9 = vector.broadcast %8 : vector<1x16xf32> to vector<9x16xf32>
    %10 = arith.addf %6, %9 : vector<9x16xf32>
    %c0_10 = arith.constant 0 : index
    %c0_11 = arith.constant 0 : index
    %c0_12 = arith.constant 0 : index
    %11 = vector.load %arg6[%c0_10, %c0_11, %c0_12] : memref<2x32x16xf32, #tpu.memory_space<vmem>>, vector<1x32x16xf32>
    %12 = vector.shape_cast %11 : vector<1x32x16xf32> to vector<32x16xf32>
    %cst_13 = arith.constant dense<0.000000e+00> : vector<9x16xf32>
    %13 = tpu.matmul %3, %12, %cst_13 {dimension_numbers = #tpu.dot_dimension_numbers<[1], [0], [0], [1], [0, 0, 1, 1], [], []>} : vector<9x32xf32>, vector<32x16xf32>, vector<9x16xf32> -> vector<9x16xf32>
    %c0_14 = arith.constant 0 : index
    %c0_15 = arith.constant 0 : index
    %c0_16 = arith.constant 0 : index
    %14 = vector.load %arg7[%c0_14, %c0_15, %c0_16] : memref<2x1x16xf32, #tpu.memory_space<vmem>>, vector<1x1x16xf32>
    %15 = vector.shape_cast %14 : vector<1x1x16xf32> to vector<1x16xf32>
    %16 = vector.broadcast %15 : vector<1x16xf32> to vector<9x16xf32>
    %17 = arith.addf %13, %16 : vector<9x16xf32>
    %c0_17 = arith.constant 0 : index
    %c0_18 = arith.constant 0 : index
    %c0_19 = arith.constant 0 : index
    %18 = vector.load %arg8[%c0_17, %c0_18, %c0_19] : memref<2x32x16xf32, #tpu.memory_space<vmem>>, vector<1x32x16xf32>
    %19 = vector.shape_cast %18 : vector<1x32x16xf32> to vector<32x16xf32>
    %cst_20 = arith.constant dense<0.000000e+00> : vector<9x16xf32>
    %20 = tpu.matmul %3, %19, %cst_20 {dimension_numbers = #tpu.dot_dimension_numbers<[1], [0], [0], [1], [0, 0, 1, 1], [], []>} : vector<9x32xf32>, vector<32x16xf32>, vector<9x16xf32> -> vector<9x16xf32>
    %c0_21 = arith.constant 0 : index
    %c0_22 = arith.constant 0 : index
    %c0_23 = arith.constant 0 : index
    %21 = vector.load %arg9[%c0_21, %c0_22, %c0_23] : memref<2x1x16xf32, #tpu.memory_space<vmem>>, vector<1x1x16xf32>
    %22 = vector.shape_cast %21 : vector<1x1x16xf32> to vector<1x16xf32>
    %23 = vector.broadcast %22 : vector<1x16xf32> to vector<9x16xf32>
    %24 = arith.addf %20, %23 : vector<9x16xf32>
    %cst_24 = arith.constant 2.500000e-01 : f32
    %25 = vector.broadcast %cst_24 : f32 to vector<9x16xf32>
    %26 = arith.mulf %10, %25 : vector<9x16xf32>
    %cst_25 = arith.constant dense<0.000000e+00> : vector<9x9xf32>
    %27 = tpu.matmul %26, %17, %cst_25 {dimension_numbers = #tpu.dot_dimension_numbers<[1], [1], [0], [0], [0, 0, 1, 0], [], []>} : vector<9x16xf32>, vector<9x16xf32>, vector<9x9xf32> -> vector<9x9xf32>
    %cst_26 = arith.constant dense<0xFF800000> : vector<9xf32>
    %28 = vector.multi_reduction <maximumf>, %27, %cst_26 [1] : vector<9x9xf32> to vector<9xf32>
    %29 = vector.shape_cast %28 : vector<9xf32> to vector<9x1xf32>
    %30 = vector.broadcast %29 : vector<9x1xf32> to vector<9x9xf32>
    %31 = arith.subf %27, %30 : vector<9x9xf32>
    %32 = math.exp %31 : vector<9x9xf32>
    %cst_27 = arith.constant dense<0.000000e+00> : vector<9xf32>
    %33 = vector.multi_reduction <add>, %32, %cst_27 [1] : vector<9x9xf32> to vector<9xf32>
    %34 = vector.shape_cast %33 : vector<9xf32> to vector<9x1xf32>
    %35 = vector.broadcast %34 : vector<9x1xf32> to vector<9x9xf32>
    %36 = arith.divf %32, %35 : vector<9x9xf32>
    %cst_28 = arith.constant dense<0.000000e+00> : vector<9x16xf32>
    %37 = tpu.matmul %36, %24, %cst_28 {dimension_numbers = #tpu.dot_dimension_numbers<[1], [0], [0], [1], [0, 0, 1, 1], [], []>} : vector<9x9xf32>, vector<9x16xf32>, vector<9x16xf32> -> vector<9x16xf32>
    %c0_29 = arith.constant 0 : index
    %c0_30 = arith.constant 0 : index
    %c0_31 = arith.constant 0 : index
    %38 = vector.load %arg10[%c0_29, %c0_30, %c0_31] : memref<2x16x32xf32, #tpu.memory_space<vmem>>, vector<1x16x32xf32>
    %39 = vector.shape_cast %38 : vector<1x16x32xf32> to vector<16x32xf32>
    %cst_32 = arith.constant dense<0.000000e+00> : vector<9x32xf32>
    %40 = tpu.matmul %37, %39, %cst_32 {dimension_numbers = #tpu.dot_dimension_numbers<[1], [0], [0], [1], [0, 0, 1, 1], [], []>} : vector<9x16xf32>, vector<16x32xf32>, vector<9x32xf32> -> vector<9x32xf32>
    %c1 = arith.constant 1 : index
    %c0_33 = arith.constant 0 : index
    %c0_34 = arith.constant 0 : index
    %41 = vector.load %arg4[%c1, %c0_33, %c0_34] : memref<2x32x16xf32, #tpu.memory_space<vmem>>, vector<1x32x16xf32>
    %42 = vector.shape_cast %41 : vector<1x32x16xf32> to vector<32x16xf32>
    %cst_35 = arith.constant dense<0.000000e+00> : vector<9x16xf32>
    %43 = tpu.matmul %3, %42, %cst_35 {dimension_numbers = #tpu.dot_dimension_numbers<[1], [0], [0], [1], [0, 0, 1, 1], [], []>} : vector<9x32xf32>, vector<32x16xf32>, vector<9x16xf32> -> vector<9x16xf32>
    %c1_36 = arith.constant 1 : index
    %c0_37 = arith.constant 0 : index
    %c0_38 = arith.constant 0 : index
    %44 = vector.load %arg5[%c1_36, %c0_37, %c0_38] : memref<2x1x16xf32, #tpu.memory_space<vmem>>, vector<1x1x16xf32>
    %45 = vector.shape_cast %44 : vector<1x1x16xf32> to vector<1x16xf32>
    %46 = vector.broadcast %45 : vector<1x16xf32> to vector<9x16xf32>
    %47 = arith.addf %43, %46 : vector<9x16xf32>
    %c1_39 = arith.constant 1 : index
    %c0_40 = arith.constant 0 : index
    %c0_41 = arith.constant 0 : index
    %48 = vector.load %arg6[%c1_39, %c0_40, %c0_41] : memref<2x32x16xf32, #tpu.memory_space<vmem>>, vector<1x32x16xf32>
    %49 = vector.shape_cast %48 : vector<1x32x16xf32> to vector<32x16xf32>
    %cst_42 = arith.constant dense<0.000000e+00> : vector<9x16xf32>
    %50 = tpu.matmul %3, %49, %cst_42 {dimension_numbers = #tpu.dot_dimension_numbers<[1], [0], [0], [1], [0, 0, 1, 1], [], []>} : vector<9x32xf32>, vector<32x16xf32>, vector<9x16xf32> -> vector<9x16xf32>
    %c1_43 = arith.constant 1 : index
    %c0_44 = arith.constant 0 : index
    %c0_45 = arith.constant 0 : index
    %51 = vector.load %arg7[%c1_43, %c0_44, %c0_45] : memref<2x1x16xf32, #tpu.memory_space<vmem>>, vector<1x1x16xf32>
    %52 = vector.shape_cast %51 : vector<1x1x16xf32> to vector<1x16xf32>
    %53 = vector.broadcast %52 : vector<1x16xf32> to vector<9x16xf32>
    %54 = arith.addf %50, %53 : vector<9x16xf32>
    %c1_46 = arith.constant 1 : index
    %c0_47 = arith.constant 0 : index
    %c0_48 = arith.constant 0 : index
    %55 = vector.load %arg8[%c1_46, %c0_47, %c0_48] : memref<2x32x16xf32, #tpu.memory_space<vmem>>, vector<1x32x16xf32>
    %56 = vector.shape_cast %55 : vector<1x32x16xf32> to vector<32x16xf32>
    %cst_49 = arith.constant dense<0.000000e+00> : vector<9x16xf32>
    %57 = tpu.matmul %3, %56, %cst_49 {dimension_numbers = #tpu.dot_dimension_numbers<[1], [0], [0], [1], [0, 0, 1, 1], [], []>} : vector<9x32xf32>, vector<32x16xf32>, vector<9x16xf32> -> vector<9x16xf32>
    %c1_50 = arith.constant 1 : index
    %c0_51 = arith.constant 0 : index
    %c0_52 = arith.constant 0 : index
    %58 = vector.load %arg9[%c1_50, %c0_51, %c0_52] : memref<2x1x16xf32, #tpu.memory_space<vmem>>, vector<1x1x16xf32>
    %59 = vector.shape_cast %58 : vector<1x1x16xf32> to vector<1x16xf32>
    %60 = vector.broadcast %59 : vector<1x16xf32> to vector<9x16xf32>
    %61 = arith.addf %57, %60 : vector<9x16xf32>
    %cst_53 = arith.constant 2.500000e-01 : f32
    %62 = vector.broadcast %cst_53 : f32 to vector<9x16xf32>
    %63 = arith.mulf %47, %62 : vector<9x16xf32>
    %cst_54 = arith.constant dense<0.000000e+00> : vector<9x9xf32>
    %64 = tpu.matmul %63, %54, %cst_54 {dimension_numbers = #tpu.dot_dimension_numbers<[1], [1], [0], [0], [0, 0, 1, 0], [], []>} : vector<9x16xf32>, vector<9x16xf32>, vector<9x9xf32> -> vector<9x9xf32>
    %cst_55 = arith.constant dense<0xFF800000> : vector<9xf32>
    %65 = vector.multi_reduction <maximumf>, %64, %cst_55 [1] : vector<9x9xf32> to vector<9xf32>
    %66 = vector.shape_cast %65 : vector<9xf32> to vector<9x1xf32>
    %67 = vector.broadcast %66 : vector<9x1xf32> to vector<9x9xf32>
    %68 = arith.subf %64, %67 : vector<9x9xf32>
    %69 = math.exp %68 : vector<9x9xf32>
    %cst_56 = arith.constant dense<0.000000e+00> : vector<9xf32>
    %70 = vector.multi_reduction <add>, %69, %cst_56 [1] : vector<9x9xf32> to vector<9xf32>
    %71 = vector.shape_cast %70 : vector<9xf32> to vector<9x1xf32>
    %72 = vector.broadcast %71 : vector<9x1xf32> to vector<9x9xf32>
    %73 = arith.divf %69, %72 : vector<9x9xf32>
    %cst_57 = arith.constant dense<0.000000e+00> : vector<9x16xf32>
    %74 = tpu.matmul %73, %61, %cst_57 {dimension_numbers = #tpu.dot_dimension_numbers<[1], [0], [0], [1], [0, 0, 1, 1], [], []>} : vector<9x9xf32>, vector<9x16xf32>, vector<9x16xf32> -> vector<9x16xf32>
    %c1_58 = arith.constant 1 : index
    %c0_59 = arith.constant 0 : index
    %c0_60 = arith.constant 0 : index
    %75 = vector.load %arg10[%c1_58, %c0_59, %c0_60] : memref<2x16x32xf32, #tpu.memory_space<vmem>>, vector<1x16x32xf32>
    %76 = vector.shape_cast %75 : vector<1x16x32xf32> to vector<16x32xf32>
    %cst_61 = arith.constant dense<0.000000e+00> : vector<9x32xf32>
    %77 = tpu.matmul %74, %76, %cst_61 {dimension_numbers = #tpu.dot_dimension_numbers<[1], [0], [0], [1], [0, 0, 1, 1], [], []>} : vector<9x16xf32>, vector<16x32xf32>, vector<9x32xf32> -> vector<9x32xf32>
    %78 = arith.addf %40, %77 : vector<9x32xf32>
    %c0_62 = arith.constant 0 : index
    %c0_63 = arith.constant 0 : index
    %79 = vector.load %arg11[%c0_62, %c0_63] : memref<1x32xf32, #tpu.memory_space<vmem>>, vector<1x32xf32>
    %80 = vector.broadcast %79 : vector<1x32xf32> to vector<9x32xf32>
    %81 = arith.addf %78, %80 : vector<9x32xf32>
    %82 = arith.addf %3, %81 : vector<9x32xf32>
    %c0_64 = arith.constant 0 : index
    %c0_65 = arith.constant 0 : index
    %83 = vector.load %arg12[%c0_64, %c0_65] : memref<1x32xf32, #tpu.memory_space<vmem>>, vector<1x32xf32>
    %c0_66 = arith.constant 0 : index
    %c0_67 = arith.constant 0 : index
    %84 = vector.load %arg13[%c0_66, %c0_67] : memref<1x32xf32, #tpu.memory_space<vmem>>, vector<1x32xf32>
    %cst_68 = arith.constant dense<0.000000e+00> : vector<9xf32>
    %85 = vector.multi_reduction <add>, %82, %cst_68 [1] : vector<9x32xf32> to vector<9xf32>
    %86 = vector.shape_cast %85 : vector<9xf32> to vector<9x1xf32>
    %cst_69 = arith.constant 3.200000e+01 : f32
    %87 = vector.broadcast %cst_69 : f32 to vector<9x1xf32>
    %88 = arith.divf %86, %87 : vector<9x1xf32>
    %89 = vector.broadcast %88 : vector<9x1xf32> to vector<9x32xf32>
    %90 = arith.subf %82, %89 : vector<9x32xf32>
    %91 = arith.mulf %90, %90 : vector<9x32xf32>
    %cst_70 = arith.constant dense<0.000000e+00> : vector<9xf32>
    %92 = vector.multi_reduction <add>, %91, %cst_70 [1] : vector<9x32xf32> to vector<9xf32>
    %93 = vector.shape_cast %92 : vector<9xf32> to vector<9x1xf32>
    %cst_71 = arith.constant 3.200000e+01 : f32
    %94 = vector.broadcast %cst_71 : f32 to vector<9x1xf32>
    %95 = arith.divf %93, %94 : vector<9x1xf32>
    %cst_72 = arith.constant 9.99999974E-6 : f32
    %96 = vector.broadcast %cst_72 : f32 to vector<9x1xf32>
    %97 = arith.addf %95, %96 : vector<9x1xf32>
    %98 = math.rsqrt %97 : vector<9x1xf32>
    %99 = vector.broadcast %98 : vector<9x1xf32> to vector<9x32xf32>
    %100 = arith.mulf %90, %99 : vector<9x32xf32>
    %101 = vector.broadcast %83 : vector<1x32xf32> to vector<9x32xf32>
    %102 = arith.mulf %100, %101 : vector<9x32xf32>
    %103 = vector.broadcast %84 : vector<1x32xf32> to vector<9x32xf32>
    %104 = arith.addf %102, %103 : vector<9x32xf32>
    %c0_73 = arith.constant 0 : index
    %c0_74 = arith.constant 0 : index
    %105 = vector.load %arg14[%c0_73, %c0_74] : memref<32x128xf32, #tpu.memory_space<vmem>>, vector<32x128xf32>
    %cst_75 = arith.constant dense<0.000000e+00> : vector<9x128xf32>
    %106 = tpu.matmul %104, %105, %cst_75 {dimension_numbers = #tpu.dot_dimension_numbers<[1], [0], [0], [1], [0, 0, 1, 1], [], []>} : vector<9x32xf32>, vector<32x128xf32>, vector<9x128xf32> -> vector<9x128xf32>
    %c0_76 = arith.constant 0 : index
    %c0_77 = arith.constant 0 : index
    %107 = vector.load %arg15[%c0_76, %c0_77] : memref<1x128xf32, #tpu.memory_space<vmem>>, vector<1x128xf32>
    %108 = vector.broadcast %107 : vector<1x128xf32> to vector<9x128xf32>
    %109 = arith.addf %106, %108 : vector<9x128xf32>
    %cst_78 = arith.constant 0.000000e+00 : f32
    %110 = vector.broadcast %cst_78 : f32 to vector<9x128xf32>
    %111 = arith.maximumf %109, %110 : vector<9x128xf32>
    %c0_79 = arith.constant 0 : index
    %c0_80 = arith.constant 0 : index
    %112 = vector.load %arg16[%c0_79, %c0_80] : memref<128x32xf32, #tpu.memory_space<vmem>>, vector<128x32xf32>
    %cst_81 = arith.constant dense<0.000000e+00> : vector<9x32xf32>
    %113 = tpu.matmul %111, %112, %cst_81 {dimension_numbers = #tpu.dot_dimension_numbers<[1], [0], [0], [1], [0, 0, 1, 1], [], []>} : vector<9x128xf32>, vector<128x32xf32>, vector<9x32xf32> -> vector<9x32xf32>
    %c0_82 = arith.constant 0 : index
    %c0_83 = arith.constant 0 : index
    %114 = vector.load %arg17[%c0_82, %c0_83] : memref<1x32xf32, #tpu.memory_space<vmem>>, vector<1x32xf32>
    %115 = vector.broadcast %114 : vector<1x32xf32> to vector<9x32xf32>
    %116 = arith.addf %113, %115 : vector<9x32xf32>
    %117 = arith.addf %104, %116 : vector<9x32xf32>
    %c0_84 = arith.constant 0 : index
    %c0_85 = arith.constant 0 : index
    %118 = vector.load %arg18[%c0_84, %c0_85] : memref<1x32xf32, #tpu.memory_space<vmem>>, vector<1x32xf32>
    %c0_86 = arith.constant 0 : index
    %c0_87 = arith.constant 0 : index
    %119 = vector.load %arg19[%c0_86, %c0_87] : memref<1x32xf32, #tpu.memory_space<vmem>>, vector<1x32xf32>
    %cst_88 = arith.constant dense<0.000000e+00> : vector<9xf32>
    %120 = vector.multi_reduction <add>, %117, %cst_88 [1] : vector<9x32xf32> to vector<9xf32>
    %121 = vector.shape_cast %120 : vector<9xf32> to vector<9x1xf32>
    %cst_89 = arith.constant 3.200000e+01 : f32
    %122 = vector.broadcast %cst_89 : f32 to vector<9x1xf32>
    %123 = arith.divf %121, %122 : vector<9x1xf32>
    %124 = vector.broadcast %123 : vector<9x1xf32> to vector<9x32xf32>
    %125 = arith.subf %117, %124 : vector<9x32xf32>
    %126 = arith.mulf %125, %125 : vector<9x32xf32>
    %cst_90 = arith.constant dense<0.000000e+00> : vector<9xf32>
    %127 = vector.multi_reduction <add>, %126, %cst_90 [1] : vector<9x32xf32> to vector<9xf32>
    %128 = vector.shape_cast %127 : vector<9xf32> to vector<9x1xf32>
    %cst_91 = arith.constant 3.200000e+01 : f32
    %129 = vector.broadcast %cst_91 : f32 to vector<9x1xf32>
    %130 = arith.divf %128, %129 : vector<9x1xf32>
    %cst_92 = arith.constant 9.99999974E-6 : f32
    %131 = vector.broadcast %cst_92 : f32 to vector<9x1xf32>
    %132 = arith.addf %130, %131 : vector<9x1xf32>
    %133 = math.rsqrt %132 : vector<9x1xf32>
    %134 = vector.broadcast %133 : vector<9x1xf32> to vector<9x32xf32>
    %135 = arith.mulf %125, %134 : vector<9x32xf32>
    %136 = vector.broadcast %118 : vector<1x32xf32> to vector<9x32xf32>
    %137 = arith.mulf %135, %136 : vector<9x32xf32>
    %138 = vector.broadcast %119 : vector<1x32xf32> to vector<9x32xf32>
    %139 = arith.addf %137, %138 : vector<9x32xf32>
    %c0_93 = arith.constant 0 : index
    %c0_94 = arith.constant 0 : index
    %140 = vector.load %arg20[%c0_93, %c0_94] : memref<1x32xf32, #tpu.memory_space<vmem>>, vector<1x32xf32>
    %c0_95 = arith.constant 0 : index
    %c0_96 = arith.constant 0 : index
    %141 = vector.load %arg21[%c0_95, %c0_96] : memref<1x32xf32, #tpu.memory_space<vmem>>, vector<1x32xf32>
    %cst_97 = arith.constant dense<0.000000e+00> : vector<9xf32>
    %142 = vector.multi_reduction <add>, %139, %cst_97 [1] : vector<9x32xf32> to vector<9xf32>
    %143 = vector.shape_cast %142 : vector<9xf32> to vector<9x1xf32>
    %cst_98 = arith.constant 3.200000e+01 : f32
    %144 = vector.broadcast %cst_98 : f32 to vector<9x1xf32>
    %145 = arith.divf %143, %144 : vector<9x1xf32>
    %146 = vector.broadcast %145 : vector<9x1xf32> to vector<9x32xf32>
    %147 = arith.subf %139, %146 : vector<9x32xf32>
    %148 = arith.mulf %147, %147 : vector<9x32xf32>
    %cst_99 = arith.constant dense<0.000000e+00> : vector<9xf32>
    %149 = vector.multi_reduction <add>, %148, %cst_99 [1] : vector<9x32xf32> to vector<9xf32>
    %150 = vector.shape_cast %149 : vector<9xf32> to vector<9x1xf32>
    %cst_100 = arith.constant 3.200000e+01 : f32
    %151 = vector.broadcast %cst_100 : f32 to vector<9x1xf32>
    %152 = arith.divf %150, %151 : vector<9x1xf32>
    %cst_101 = arith.constant 9.99999974E-6 : f32
    %153 = vector.broadcast %cst_101 : f32 to vector<9x1xf32>
    %154 = arith.addf %152, %153 : vector<9x1xf32>
    %155 = math.rsqrt %154 : vector<9x1xf32>
    %156 = vector.broadcast %155 : vector<9x1xf32> to vector<9x32xf32>
    %157 = arith.mulf %147, %156 : vector<9x32xf32>
    %158 = vector.broadcast %140 : vector<1x32xf32> to vector<9x32xf32>
    %159 = arith.mulf %157, %158 : vector<9x32xf32>
    %160 = vector.broadcast %141 : vector<1x32xf32> to vector<9x32xf32>
    %161 = arith.addf %159, %160 : vector<9x32xf32>
    %c0_102 = arith.constant 0 : index
    %c0_103 = arith.constant 0 : index
    %c0_104 = arith.constant 0 : index
    %162 = vector.load %arg22[%c0_102, %c0_103, %c0_104] : memref<1x9x32xf32, #tpu.memory_space<vmem>>, vector<1x9x32xf32>
    %163 = vector.shape_cast %162 : vector<1x9x32xf32> to vector<9x32xf32>
    %164 = vector.shape_cast %161 : vector<9x32xf32> to vector<1x9x32xf32>
    tpu.vector_store %arg22[%c0_102, %c0_103, %c0_104], %164 {strides = array<i32>} : memref<1x9x32xf32, #tpu.memory_space<vmem>>, vector<1x9x32xf32>,
    return
  }
  func.func @transform_0(%arg0: i32, %arg1: memref<1xi32, #tpu.memory_space<smem>>) -> (i32, i32, i32) {
    %c0_i32 = arith.constant 0 : i32
    %c0_i32_0 = arith.constant 0 : i32
    %c0_i32_1 = arith.constant 0 : i32
    return %arg0, %c0_i32, %c0_i32_0 : i32, i32, i32
  }
  func.func @transform_1(%arg0: i32, %arg1: memref<1xi32, #tpu.memory_space<smem>>) -> (i32, i32) {
    %c0_i32 = arith.constant 0 : i32
    %c0_i32_0 = arith.constant 0 : i32
    %c0_i32_1 = arith.constant 0 : i32
    return %c0_i32, %c0_i32_0 : i32, i32
  }
  func.func @transform_2(%arg0: i32, %arg1: memref<1xi32, #tpu.memory_space<smem>>) -> (i32, i32, i32) {
    %c0_i32 = arith.constant 0 : i32
    %c0_i32_0 = arith.constant 0 : i32
    %c0_i32_1 = arith.constant 0 : i32
    %c0_i32_2 = arith.constant 0 : i32
    return %c0_i32, %c0_i32_0, %c0_i32_1 : i32, i32, i32
  }
  func.func @transform_3(%arg0: i32, %arg1: memref<1xi32, #tpu.memory_space<smem>>) -> (i32, i32, i32) {
    %c0_i32 = arith.constant 0 : i32
    %c0_i32_0 = arith.constant 0 : i32
    %c0_i32_1 = arith.constant 0 : i32
    %c0_i32_2 = arith.constant 0 : i32
    return %c0_i32, %c0_i32_0, %c0_i32_1 : i32, i32, i32
  }
  func.func @transform_4(%arg0: i32, %arg1: memref<1xi32, #tpu.memory_space<smem>>) -> (i32, i32, i32) {
    %c0_i32 = arith.constant 0 : i32
    %c0_i32_0 = arith.constant 0 : i32
    %c0_i32_1 = arith.constant 0 : i32
    %c0_i32_2 = arith.constant 0 : i32
    return %c0_i32, %c0_i32_0, %c0_i32_1 : i32, i32, i32
  }
  func.func @transform_5(%arg0: i32, %arg1: memref<1xi32, #tpu.memory_space<smem>>) -> (i32, i32, i32) {
    %c0_i32 = arith.constant 0 : i32
    %c0_i32_0 = arith.constant 0 : i32
    %c0_i32_1 = arith.constant 0 : i32
    %c0_i32_2 = arith.constant 0 : i32
    return %c0_i32, %c0_i32_0, %c0_i32_1 : i32, i32, i32
  }
  func.func @transform_6(%arg0: i32, %arg1: memref<1xi32, #tpu.memory_space<smem>>) -> (i32, i32, i32) {
    %c0_i32 = arith.constant 0 : i32
    %c0_i32_0 = arith.constant 0 : i32
    %c0_i32_1 = arith.constant 0 : i32
    %c0_i32_2 = arith.constant 0 : i32
    return %c0_i32, %c0_i32_0, %c0_i32_1 : i32, i32, i32
  }
  func.func @transform_7(%arg0: i32, %arg1: memref<1xi32, #tpu.memory_space<smem>>) -> (i32, i32, i32) {
    %c0_i32 = arith.constant 0 : i32
    %c0_i32_0 = arith.constant 0 : i32
    %c0_i32_1 = arith.constant 0 : i32
    %c0_i32_2 = arith.constant 0 : i32
    return %c0_i32, %c0_i32_0, %c0_i32_1 : i32, i32, i32
  }
  func.func @transform_8(%arg0: i32, %arg1: memref<1xi32, #tpu.memory_space<smem>>) -> (i32, i32, i32) {
    %c0_i32 = arith.constant 0 : i32
    %c0_i32_0 = arith.constant 0 : i32
    %c0_i32_1 = arith.constant 0 : i32
    %c0_i32_2 = arith.constant 0 : i32
    return %c0_i32, %c0_i32_0, %c0_i32_1 : i32, i32, i32
  }
  func.func @transform_9(%arg0: i32, %arg1: memref<1xi32, #tpu.memory_space<smem>>) -> (i32, i32) {
    %c0_i32 = arith.constant 0 : i32
    %c0_i32_0 = arith.constant 0 : i32
    %c0_i32_1 = arith.constant 0 : i32
    return %c0_i32, %c0_i32_0 : i32, i32
  }
  func.func @transform_10(%arg0: i32, %arg1: memref<1xi32, #tpu.memory_space<smem>>) -> (i32, i32) {
    %c0_i32 = arith.constant 0 : i32
    %c0_i32_0 = arith.constant 0 : i32
    %c0_i32_1 = arith.constant 0 : i32
    return %c0_i32, %c0_i32_0 : i32, i32
  }
  func.func @transform_11(%arg0: i32, %arg1: memref<1xi32, #tpu.memory_space<smem>>) -> (i32, i32) {
    %c0_i32 = arith.constant 0 : i32
    %c0_i32_0 = arith.constant 0 : i32
    %c0_i32_1 = arith.constant 0 : i32
    return %c0_i32, %c0_i32_0 : i32, i32
  }
  func.func @transform_12(%arg0: i32, %arg1: memref<1xi32, #tpu.memory_space<smem>>) -> (i32, i32) {
    %c0_i32 = arith.constant 0 : i32
    %c0_i32_0 = arith.constant 0 : i32
    %c0_i32_1 = arith.constant 0 : i32
    return %c0_i32, %c0_i32_0 : i32, i32
  }
  func.func @transform_13(%arg0: i32, %arg1: memref<1xi32, #tpu.memory_space<smem>>) -> (i32, i32) {
    %c0_i32 = arith.constant 0 : i32
    %c0_i32_0 = arith.constant 0 : i32
    %c0_i32_1 = arith.constant 0 : i32
    return %c0_i32, %c0_i32_0 : i32, i32
  }
  func.func @transform_14(%arg0: i32, %arg1: memref<1xi32, #tpu.memory_space<smem>>) -> (i32, i32) {
    %c0_i32 = arith.constant 0 : i32
    %c0_i32_0 = arith.constant 0 : i32
    %c0_i32_1 = arith.constant 0 : i32
    return %c0_i32, %c0_i32_0 : i32, i32
  }
  func.func @transform_15(%arg0: i32, %arg1: memref<1xi32, #tpu.memory_space<smem>>) -> (i32, i32) {
    %c0_i32 = arith.constant 0 : i32
    %c0_i32_0 = arith.constant 0 : i32
    %c0_i32_1 = arith.constant 0 : i32
    return %c0_i32, %c0_i32_0 : i32, i32
  }
  func.func @transform_16(%arg0: i32, %arg1: memref<1xi32, #tpu.memory_space<smem>>) -> (i32, i32) {
    %c0_i32 = arith.constant 0 : i32
    %c0_i32_0 = arith.constant 0 : i32
    %c0_i32_1 = arith.constant 0 : i32
    return %c0_i32, %c0_i32_0 : i32, i32
  }
  func.func @transform_17(%arg0: i32, %arg1: memref<1xi32, #tpu.memory_space<smem>>) -> (i32, i32) {
    %c0_i32 = arith.constant 0 : i32
    %c0_i32_0 = arith.constant 0 : i32
    %c0_i32_1 = arith.constant 0 : i32
    return %c0_i32, %c0_i32_0 : i32, i32
  }
  func.func @transform_18(%arg0: i32, %arg1: memref<1xi32, #tpu.memory_space<smem>>) -> (i32, i32) {
    %c0_i32 = arith.constant 0 : i32
    %c0_i32_0 = arith.constant 0 : i32
    %c0_i32_1 = arith.constant 0 : i32
    return %c0_i32, %c0_i32_0 : i32, i32
  }
  func.func @transform_19(%arg0: i32, %arg1: memref<1xi32, #tpu.memory_space<smem>>) -> (i32, i32) {
    %c0_i32 = arith.constant 0 : i32
    %c0_i32_0 = arith.constant 0 : i32
    %c0_i32_1 = arith.constant 0 : i32
    return %c0_i32, %c0_i32_0 : i32, i32
  }
  func.func @transform_20(%arg0: i32, %arg1: memref<1xi32, #tpu.memory_space<smem>>) -> (i32, i32, i32) {
    %c0_i32 = arith.constant 0 : i32
    %c0_i32_0 = arith.constant 0 : i32
    %c0_i32_1 = arith.constant 0 : i32
    return %arg0, %c0_i32, %c0_i32_0 : i32, i32, i32
  }
}

</mosaic_0001>

<bundles_post_ra>
// kernel: tpu_custom_call.1
= control target key start
LH: loop header
LB: loop body
LE: loop exit
PB: predicated region body
PF: predicated region fallthrough
CT: control target
= control target key end

     0   :  { %s2900_s0 = inlined_call_operand.<no memory space> [shape: s32[1], index: 0, kind: input, shape index: {}]   ;;  %s2901_s1 = inlined_call_operand.vmem [shape: f32[2,9,32], index: 1, kind: input, shape index: {}]   ;;  %s2902_s2 = inlined_call_operand.vmem [shape: f32[9,32], index: 2, kind: input, shape index: {}]   ;;  %s2903_s3 = inlined_call_operand.vmem [shape: f32[2,32,16], index: 3, kind: input, shape index: {}]   ;;  %s2904_s4 = inlined_call_operand.vmem [shape: f32[2,1,16], index: 4, kind: input, shape index: {}]   ;;  %s2905_s5 = inlined_call_operand.vmem [shape: f32[2,32,16], index: 5, kind: input, shape index: {}]   ;;  %s2906_s6 = inlined_call_operand.vmem [shape: f32[2,1,16], index: 6, kind: input, shape index: {}]   ;;  %s2907_s7 = inlined_call_operand.vmem [shape: f32[2,32,16], index: 7, kind: input, shape index: {}]   ;;  %s2908_s8 = inlined_call_operand.vmem [shape: f32[2,1,16], index: 8, kind: input, shape index: {}]   ;;  %s2909_s9 = inlined_call_operand.vmem [shape: f32[2,16,32], index: 9, kind: input, shape index: {}]   ;;  %s2910_s10 = inlined_call_operand.vmem [shape: f32[1,32], index: 10, kind: input, shape index: {}]   ;;  %s2911_s11 = inlined_call_operand.vmem [shape: f32[1,32], index: 11, kind: input, shape index: {}]   ;;  %s2912_s12 = inlined_call_operand.vmem [shape: f32[1,32], index: 12, kind: input, shape index: {}]   ;;  %s2913_s13 = inlined_call_operand.vmem [shape: f32[32,128], index: 13, kind: input, shape index: {}]   ;;  %s2914_s14 = inlined_call_operand.vmem [shape: f32[1,128], index: 14, kind: input, shape index: {}]   ;;  %s2915_s15 = inlined_call_operand.vmem [shape: f32[128,32], index: 15, kind: input, shape index: {}]   ;;  %s2916_s16 = inlined_call_operand.vmem [shape: f32[1,32], index: 16, kind: input, shape index: {}]   ;;  %s2917_s17 = inlined_call_operand.vmem [shape: f32[1,32], index: 17, kind: input, shape index: {}]   ;;  %s2918_s18 = inlined_call_operand.vmem [shape: f32[1,32], index: 18, kind: input, shape index: {}]   ;;  %s2919_s19 = inlined_call_operand.vmem [shape: f32[1,32], index: 19, kind: input, shape index: {}]   ;;  %s2920_s20 = inlined_call_operand.vmem [shape: f32[1,32], index: 20, kind: input, shape index: {}]   ;;  %s2921_s21 = inlined_call_operand.vmem [shape: f32[2,9,32], index: 21, kind: output, shape index: {}]  }
   0x1   :  { %2927 = sst [smem:[#allocation5_spill]] %s2901_s1 }
   0x2   :  { %2928 = sst [smem:[#allocation6_spill]] %s2902_s2  ;;  %s2593_s2 = smov 0  }
   0x3   :  { %2929 = sst [smem:[#allocation7_spill]] %s2903_s3 }
   0x4   :  { %2930 = sst [smem:[#allocation8_spill]] %s2904_s4 }
   0x5   :  { %2931 = sst [smem:[#allocation9_spill]] %s2905_s5 }
   0x6   :  { %2932 = sst [smem:[#allocation10_spill]] %s2921_s21 }
   0x7 LB: > { %2933 = sst [smem:[#allocation4_spill]] %s2481_s2  ;;  %s2124_s25 = sadd.s32 4294967295, %s2481_s2   ;;  %s2481_s2 = sphi %s2593_s2, %s32_s2  }
   0x8   : > { %p2128_p0 = scmp.ge.s32.totalorder %s2481_s2, 1  ;;  %p564_p1 = scmp.lt.s32.totalorder %s2481_s2, 3 }
   0xa   : > { %p565_p2 = pnand %p2128_p0, %p564_p1 }
   0xb   : > { %s2934_s3 = sld [smem:[#allocation7_spill]] (!%p565_p2)  ;;  %p622_p3 = scmp.lt.s32.totalorder (!%p565_p2), %s2124_s25, 1 }
   0xc   : > { %568 = sbr.rel (%p565_p2) target bundleno = 3189 (0xc75), region = 100  ;;  %s2935_s24 = sld [smem:[#allocation6_spill]] (!%p565_p2) }
   0xd   : > { %s2936_s0 = sld [smem:[#allocation5_spill]] (!%p565_p2) }
   0xe   : > { %s2937_s2 = sld [smem:[#allocation9_spill]] (!%p565_p2) }
   0xf   : > { %s2940_s30 = sld [smem:[#allocation10_spill]] (!%p565_p2) }
  0x11   : > { %v641_v0 = vld [vmem:[%s2934_s3 + $0x18] sm:$0xff]  ;;  %v640_v1 = vld [vmem:[%s2934_s3 + $0x10] sm:$0xff]  ;;  %v639_v2 = vld [vmem:[%s2934_s3 + $0x8] sm:$0xff]  ;;  %s2943_s25 = smov (!%p622_p3, %s2124_s25), 1  ;;  %vm649_vm0 = vcmask 261120   ;;  %vm905_vm1 = vcmask 130048  }
  0x12   : > { %2285 = vmatprep.subr.mxu0 %v641_v0  ;;  %v638_v3 = vld [vmem:[%s2934_s3] sm:$0xff]  ;;  %s2199_s22 = sshll.u32 %s2943_s25, 4  ;;  %v635_v5 = vld [vmem:[%s2935_s24 + $0x8] sm:$0x1]  ;;  %v820_v26 = vld [vmem:[%s2907_s7 + $0x18] sm:$0xff]  ;;  %vm993_vm2 = vcmask 72704  }
  0x13   : > { %2286 = vmatpush3.msra.mxu0 %v641_v0  ;;  %v634_v4 = vld [vmem:[%s2935_s24] sm:$0xff]  ;;  %s626_s4 = scalar_lea.vmem %s2936_s0, %s2199_s22  ;;  %v819_v27 = vld [vmem:[%s2907_s7 + $0x10] sm:$0xff]  ;;  %v818_v28 = vld [vmem:[%s2907_s7 + $0x8] sm:$0xff]  ;;  %vm997_vm3 = vcmask 65536   ;;  %vm1023_vm4 = vcmask 1040384   ;;  %vm1744_vm5 = vcmask 253952  }
  0x14   : > { %2287 = vmatprep.subr.mxu0 %v640_v1  ;;  %v632_v6 = vld [vmem:[%s626_s4] sm:$0xff]  ;;  %s2938_s21 = smov %s2937_s2  ;;  %v734_v7 = vld [vmem:[%s2937_s2 + $0x18] sm:$0xff]  ;;  %v633_v8 = vld [vmem:[%s626_s4 + $0x8] sm:$0x1]  ;;  %s2939_s4 = sld [smem:[#allocation8_spill]] }
  0x15   : > { %2288 = vmatpush3.msra.mxu0 %v640_v1  ;;  %v2630_v9 = vadd.f32 %v634_v4, %v632_v6  ;;  %v2632_v10 = vadd.f32 %v635_v5, %v633_v8  ;;  %v733_v11 = vld [vmem:[%s2938_s21 + $0x10] sm:$0xff]  ;;  %v732_v12 = vld [vmem:[%s2938_s21 + $0x8] sm:$0xff]  ;;  %v731_v13 = vld [vmem:[%s2938_s21] sm:$0xff]  ;;  %s631_s5 = scalar_lea.vmem %s2940_s30, %s2199_s22 }
  0x16   : > { %2289 = vmatprep.subr.mxu0 %v639_v2  ;;  %v2136_v19 = vld [vmem:[%s2906_s6] ss:$0 sm:$0xff]  ;;  %v2160_v49 = vld [vmem:[%s2938_s21 + $0x38] sm:$0xff]  ;;  %v2151_v51 = vld [vmem:[%s2934_s3 + $0x30] sm:$0xff] }
  0x17   : > { %2290 = vmatpush3.msra.mxu0 %v639_v2  ;;  %2293 = vmatprep.mubr.msk.f32.mxu0 %vm649_vm0, %v2630_v9  ;;  %v817_v29 = vld [vmem:[%s2907_s7] sm:$0xff]  ;;  %v2152_v50 = vld [vmem:[%s2934_s3 + $0x38] sm:$0xff]  ;;  %v2150_v52 = vld [vmem:[%s2934_s3 + $0x28] sm:$0xff] }
  0x18   : > { %2291 = vmatprep.subr.mxu0 %v638_v3  ;;  %v2139_v45 = vld [vmem:[%s2908_s8] ss:$0 sm:$0xff]  ;;  %v2168_v54 = vld [vmem:[%s2907_s7 + $0x38] sm:$0xff]  ;;  %v2167_v55 = vld [vmem:[%s2907_s7 + $0x30] sm:$0xff] }
  0x19   : > { %2292 = vmatpush3.msra.mxu0 %v638_v3  ;;  %v2149_v53 = vld [vmem:[%s2934_s3 + $0x20] sm:$0xff]  ;;  %v2166_v56 = vld [vmem:[%s2907_s7 + $0x28] sm:$0xff]  ;;  %v2159_v0 = vld [vmem:[%s2938_s21 + $0x30] sm:$0xff] }
  0x1a   : > { %2296 = vmatprep.subr.mxu0 %v734_v7  ;;  %2294 = vmatmul.mubr.msk.f32.vlgmr.msra.gmra.mxu0 %vm649_vm0, %v2632_v10  ;;  %v2133_v15 = vld [vmem:[%s2939_s4] ss:$0 sm:$0xff]  ;;  %v2158_v1 = vld [vmem:[%s2938_s21 + $0x28] sm:$0xff]  ;;  %v2154_v6 = vld [vmem:[%s2939_s4 + $0x1] ss:$0 sm:$0xff] }
  0x1b   : > { %2297 = vmatpush3.msra.mxu0 %v734_v7  ;;  %2304 = vmatprep.mubr.msk.f32.mxu0 %vm649_vm0, %v2630_v9  ;;  %v2165_v57 = vld [vmem:[%s2907_s7 + $0x20] sm:$0xff]  ;;  %v1103_v3 = vld [vmem:[%s2909_s9 + $0x8] sm:$0xff] }
  0x1c   : > { %2298 = vmatprep.subr.mxu0 %v733_v11  ;;  %v2157_v2 = vld [vmem:[%s2938_s21 + $0x20] sm:$0xff] }
  0x1d   : > { %2299 = vmatpush3.msra.mxu0 %v733_v11  ;;  %v1102_v4 = vld [vmem:[%s2909_s9] sm:$0xff] }
  0x1e   : > { %2300 = vmatprep.subr.mxu0 %v732_v12 }
  0x1f   : > { %2301 = vmatpush3.msra.mxu0 %v732_v12 }
  0x20   : > { %2302 = vmatprep.subr.mxu0 %v731_v13 }
  0x21   : > { %2303 = vmatpush3.msra.mxu0 %v731_v13 }
  0x22   : > { %2305 = vmatmul.mubr.msk.f32.vlgmr.msra.gmra.mxu0 %vm649_vm0, %v2632_v10  ;;  %2307 = vmatprep.subr.mxu0 %v820_v26 }
  0x23   : > { %2315 = vmatprep.mubr.msk.f32.mxu0 %vm649_vm0, %v2630_v9  ;;  %2308 = vmatpush3.msra.mxu0 %v820_v26 }
  0x24   : > { %2309 = vmatprep.subr.mxu0 %v819_v27 }
  0x25   : > { %2310 = vmatpush3.msra.mxu0 %v819_v27 }
  0x26   : > { %2311 = vmatprep.subr.mxu0 %v818_v28 }
  0x27   : > { %2312 = vmatpush3.msra.mxu0 %v818_v28 }
  0x28   : > { %2313 = vmatprep.subr.mxu0 %v817_v29 }
  0x29   : > { %2314 = vmatpush3.msra.mxu0 %v817_v29 }
  0x2a   : > { %2316 = vmatmul.mubr.msk.f32.vlgmr.msra.gmra.mxu0 %vm649_vm0, %v2632_v10 }
  0xda   : > { %v2295_v14 = vpop.f32.mrf.mxu0 }
  0xdb   : > { %v728_v24 = vadd.f32 %v2295_v14, %v2133_v15 }
  0xdc   : > { %v722_v16 = vpop.f32.mrf.mxu0 }
  0xdd   : > { %v723_v17 = vadd.f32 %v2133_v15, %v722_v16  ;;  %v904_v25 = vmul.f32 0.25, %v728_v24  ;;  %v2162_v15 = vld [vmem:[%s2906_s6 + $0x1] ss:$0 sm:$0xff] }
  0xdf   : > { %v903_v18 = vmul.f32 0.25, %v723_v17 }
  0xe1   : > { %2322 = vmatprep.mubr.msk.f32.mxu1 %vm905_vm1, %v903_v18 }
  0xe2   : > { %v2306_v20 = vpop.f32.mrf.mxu0 }
  0xe3   : > { %v814_v21 = vadd.f32 %v2306_v20, %v2136_v19 }
  0xe4   : > { %v808_v22 = vpop.f32.mrf.mxu0 }
  0xe5   : > { %v809_v23 = vadd.f32 %v2136_v19, %v808_v22  ;;  %2318 = vmatprep.subr.msk.mxu1 %vm905_vm1, %v814_v21  ;;  %v2170_v19 = vld [vmem:[%s2908_s8 + $0x1] ss:$0 sm:$0xff] }
  0xe6   : > { %2319 = vmatpush3.xpose.msk.msra.mxu1 %vm905_vm1, %v814_v21 }
  0xe7   : > { %2320 = vmatprep.subr.msk.mxu1 %vm905_vm1, %v809_v23 }
  0xea   : > { %2321 = vmatpush3.xpose.msk.msra.mxu1 %vm905_vm1, %v809_v23  ;;  %v2317_v44 = vpop.f32.mrf.mxu0 }
  0xeb   : > { %v900_v46 = vadd.f32 %v2317_v44, %v2139_v45  ;;  %2332 = vmatprep.subr.mxu1 %v2152_v50 }
  0xec   : > { %v894_v47 = vpop.f32.mrf.mxu0 }
  0xed   : > { %2323 = vmatmul.mubr.msk.f32.vlgmr.msra.gmra.mxu1 %vm905_vm1, %v904_v25  ;;  %v895_v48 = vadd.f32 %v2139_v45, %v894_v47  ;;  %2325 = vmatprep.subr.msk.mxu0 %vm1023_vm4, %v900_v46  ;;  %v2180_v47 = vld [vmem:[%s2909_s9 + $0x10] sm:$0xff] }
  0xee   : > { %2340 = vmatprep.mubr.msk.f32.mxu1 %vm649_vm0, %v2630_v9  ;;  %2326 = vmatpush3.msk.msra.mxu0 %vm1023_vm4, %v900_v46 }
  0xef   : > { %2327 = vmatprep.subr.mxu0 %v895_v48  ;;  %2333 = vmatpush3.msra.mxu1 %v2152_v50 }
  0xf0   : > { %2328 = vmatpush3.msra.mxu0 %v895_v48  ;;  %2334 = vmatprep.subr.mxu1 %v2151_v51 }
  0xf1   : > { %2343 = vmatprep.subr.mxu0 %v2160_v49  ;;  %2335 = vmatpush3.msra.mxu1 %v2151_v51 }
  0xf2   : > { %2336 = vmatprep.subr.mxu1 %v2150_v52 }
  0xf3   : > { %2337 = vmatpush3.msra.mxu1 %v2150_v52  ;;  %v2186_v52 = vld [vmem:[%s2910_s10] ss:$0 sm:$0xff] }
  0xf4   : > { %2338 = vmatprep.subr.mxu1 %v2149_v53 }
  0xf5   : > { %2339 = vmatpush3.msra.mxu1 %v2149_v53 }
  0xf6   : > { %2341 = vmatmul.mubr.msk.f32.vlgmr.msra.gmra.mxu1 %vm649_vm0, %v2632_v10  ;;  %2354 = vmatprep.subr.mxu1 %v2168_v54 }
  0xf7   : > { %2355 = vmatpush3.msra.mxu1 %v2168_v54  ;;  %2362 = vmatprep.mubr.msk.f32.mxu1 %vm649_vm0, %v2630_v9 }
  0xf8   : > { %2356 = vmatprep.subr.mxu1 %v2167_v55 }
  0xf9   : > { %2357 = vmatpush3.msra.mxu1 %v2167_v55 }
  0xfa   : > { %2358 = vmatprep.subr.mxu1 %v2166_v56 }
  0xfb   : > { %2359 = vmatpush3.msra.mxu1 %v2166_v56 }
  0xfc   : > { %2360 = vmatprep.subr.mxu1 %v2165_v57 }
  0xfd   : > { %2361 = vmatpush3.msra.mxu1 %v2165_v57 }
  0xfe   : > { %2363 = vmatmul.mubr.msk.f32.vlgmr.msra.gmra.mxu1 %vm649_vm0, %v2632_v10  ;;  %2386 = vmatprep.subr.mxu1 %v1103_v3 }
  0xff   : > { %2387 = vmatpush3.msra.mxu1 %v1103_v3 }
 0x100   : > { %2388 = vmatprep.subr.mxu1 %v1102_v4 }
 0x101   : > { %2389 = vmatpush3.msra.mxu1 %v1102_v4 }
 0x1ad   : > { %v2324_v30 = vpop.f32.mrf.mxu1 }
 0x1ae   : > { %v998_v33 = vsel %vm997_vm3, %v2324_v30, -inf }
 0x1af   : > { %v984_v31 = vpop.f32.mrf.mxu1 }
 0x1b0   : > { %v994_v32 = vsel %vm993_vm2, %v984_v31, -inf }
 0x1b1   : > { %995 = vmax.xlane.f32.xlu0 %v994_v32 }
 0x1b5   : > { %999 = vmax.xlane.f32.xlu0 %v998_v33 }
 0x1b6   : > { %v2342_v5 = vpop.f32.mrf.mxu1 }
 0x1b7   : > { %v1189_v7 = vadd.f32 %v2342_v5, %v2154_v6 }
 0x1b8   : > { %v1183_v8 = vpop.f32.mrf.mxu1 }
 0x1b9   : > { %v1184_v11 = vadd.f32 %v2154_v6, %v1183_v8  ;;  %v1369_v24 = vmul.f32 0.25, %v1189_v7  ;;  %v1788_v7 = vld [vmem:[%s2913_s13 + $0x18] sm:$0xff]  ;;  %v1787_v8 = vld [vmem:[%s2913_s13 + $0x10] sm:$0xff] }
 0x1bb   : > { %v1368_v12 = vmul.f32 0.25, %v1184_v11  ;;  %v1786_v11 = vld [vmem:[%s2913_s13 + $0x8] sm:$0xff] }
 0x1be   : > { %v2364_v21 = vpop.f32.mrf.mxu1 }
 0x1bf   : > { %v1365_v22 = vadd.f32 %v2364_v21, %v2170_v19  ;;  %v1886_v21 = vld [vmem:[%s2915_s15 + $0x38] sm:$0xff] }
 0x1c0   : > { %v1359_v23 = vpop.f32.mrf.mxu1 }
 0x1c1   : > { %v1360_v25 = vadd.f32 %v2170_v19, %v1359_v23  ;;  %v1888_v19 = vld [vmem:[%s2915_s15 + $0x48] sm:$0xff] }
 0x1c2   : > { %v1884_v23 = vld [vmem:[%s2915_s15 + $0x28] sm:$0xff] }
 0x23a   : > { %v996_v34 = vpop.xlane.xlu0 %995 }
 0x23b   : > { %v1001_v35 = vsub.f32 %v984_v31, %v996_v34 }
 0x23d   : > { %v1003_v36 = vmul.f32 1.442695, %v1001_v35 }
 0x23e   : > { %v1000_v37 = vpop.xlane.xlu0 %999 }
 0x23f   : > { %2447 = vpow2.f32 %v1003_v36  ;;  %v1002_v38 = vsub.f32 %v2324_v30, %v1000_v37 }
 0x241   : > { %v1005_v39 = vmul.f32 1.442695, %v1002_v38 }
 0x243   : > { %2449 = vpow2.f32 %v1005_v39 }
 0x24c   : > { %v2448_v40 = vpop.eup %2447 }
 0x24d   : > { %v1007_v41 = vsel %vm993_vm2, %v2448_v40, 0.0 }
 0x24e   : > { %1008 = vadd.xlane.f32.xlu1 %v1007_v41 }
 0x250   : > { %v2450_v42 = vpop.eup %2449 }
 0x251   : > { %v1010_v43 = vsel %vm997_vm3, %v2450_v42, 0.0 }
 0x252   : > { %1011 = vadd.xlane.f32.xlu1 %v1010_v43 }
 0x2d7   : > { %v1009_v58 = vpop.xlane.xlu1 %1008 }
 0x2d8   : > { %2451 = vrcp.f32 %v1009_v58 }
 0x2db   : > { %v1012_v59 = vpop.xlane.xlu1 %1011 }
 0x2dc   : > { %2453 = vrcp.f32 %v1012_v59 }
 0x2e5   : > { %v2452_v60 = vpop.eup %2451 }
 0x2e6   : > { %v1014_v61 = vmul.f32 %v2452_v60, %v2448_v40  ;;  %v2181_v40 = vld [vmem:[%s2909_s9 + $0x18] sm:$0xff] }
 0x2e8   : > { %2329 = vmatprep.mubr.msk.f32.mxu0 %vm993_vm2, %v1014_v61 }
 0x2e9   : > { %v2454_v62 = vpop.eup %2453 }
 0x2ea   : > { %v1016_v63 = vmul.f32 %v2454_v62, %v2450_v42 }
 0x2ec   : > { %2330 = vmatmul.mubr.msk.f32.vlgmr.msra.gmra.mxu0 %vm993_vm2, %v1016_v63 }
 0x2ed   : > { %2344 = vmatpush3.msra.mxu0 %v2160_v49  ;;  %2351 = vmatprep.mubr.msk.f32.mxu0 %vm649_vm0, %v2630_v9 }
 0x2ee   : > { %2345 = vmatprep.subr.mxu0 %v2159_v0 }
 0x2ef   : > { %2346 = vmatpush3.msra.mxu0 %v2159_v0 }
 0x2f0   : > { %2347 = vmatprep.subr.mxu0 %v2158_v1 }
 0x2f1   : > { %2348 = vmatpush3.msra.mxu0 %v2158_v1 }
 0x2f2   : > { %2349 = vmatprep.subr.mxu0 %v2157_v2 }
 0x2f3   : > { %2350 = vmatpush3.msra.mxu0 %v2157_v2 }
 0x2f4   : > { %2352 = vmatmul.mubr.msk.f32.vlgmr.msra.gmra.mxu0 %vm649_vm0, %v2632_v10 }
 0x2f5   : > { %2369 = vmatprep.mubr.msk.f32.mxu0 %vm905_vm1, %v1368_v12  ;;  %v1785_v12 = vld [vmem:[%s2913_s13] sm:$0xff] }
 0x3ac   : > { %v2331_v13 = vpop.f32.mrf.mxu0 }
 0x3ae   : > { %v1093_v14 = vpop.f32.mrf.mxu0 }
 0x3af   : > { %2390 = vmatprep.mubr.msk.f32.mxu1 %vm905_vm1, %v1093_v14  ;;  %v1893_v14 = vld [vmem:[%s2915_s15 + $0x70] sm:$0xff] }
 0x3b0   : > { %2391 = vmatmul.mubr.msk.f32.vlgmr.msra.gmra.mxu1 %vm905_vm1, %v2331_v13  ;;  %v1894_v13 = vld [vmem:[%s2915_s15 + $0x78] sm:$0xff] }
 0x3b1   : > { %2404 = vmatprep.subr.mxu1 %v1894_v13 }
 0x3b2   : > { %2405 = vmatpush3.msra.mxu1 %v1894_v13 }
 0x3b3   : > { %2406 = vmatprep.subr.mxu1 %v1893_v14 }
 0x3b4   : > { %v2353_v16 = vpop.f32.mrf.mxu0  ;;  %2407 = vmatpush3.msra.mxu1 %v1893_v14  ;;  %v2193_v14 = vld [vmem:[%s2917_s17] ss:$0 sm:$0xff] }
 0x3b5   : > { %v1277_v17 = vadd.f32 %v2353_v16, %v2162_v15  ;;  %v1891_v16 = vld [vmem:[%s2915_s15 + $0x60] sm:$0xff] }
 0x3b6   : > { %v1271_v18 = vpop.f32.mrf.mxu0 }
 0x3b7   : > { %v1272_v20 = vadd.f32 %v2162_v15, %v1271_v18  ;;  %2365 = vmatprep.subr.msk.mxu0 %vm905_vm1, %v1277_v17  ;;  %v1892_v15 = vld [vmem:[%s2915_s15 + $0x68] sm:$0xff]  ;;  %v1889_v18 = vld [vmem:[%s2915_s15 + $0x50] sm:$0xff] }
 0x3b8   : > { %2366 = vmatpush3.xpose.msk.msra.mxu0 %vm905_vm1, %v1277_v17  ;;  %2408 = vmatprep.subr.mxu1 %v1892_v15  ;;  %v1890_v17 = vld [vmem:[%s2915_s15 + $0x58] sm:$0xff] }
 0x3b9   : > { %2367 = vmatprep.subr.msk.mxu0 %vm905_vm1, %v1272_v20  ;;  %2409 = vmatpush3.msra.mxu1 %v1892_v15 }
 0x3ba   : > { %2410 = vmatprep.subr.mxu1 %v1891_v16 }
 0x3bb   : > { %2411 = vmatpush3.msra.mxu1 %v1891_v16 }
 0x3bc   : > { %2368 = vmatpush3.xpose.msk.msra.mxu0 %vm905_vm1, %v1272_v20  ;;  %2412 = vmatprep.subr.mxu1 %v1890_v17  ;;  %v1887_v20 = vld [vmem:[%s2915_s15 + $0x40] sm:$0xff] }
 0x3bd   : > { %2372 = vmatprep.subr.msk.mxu0 %vm1023_vm4, %v1365_v22  ;;  %2413 = vmatpush3.msra.mxu1 %v1890_v17  ;;  %v2194_v17 = vld [vmem:[%s2918_s18] ss:$0 sm:$0xff] }
 0x3be   : > { %2414 = vmatprep.subr.mxu1 %v1889_v18 }
 0x3bf   : > { %2370 = vmatmul.mubr.msk.f32.vlgmr.msra.gmra.mxu0 %vm905_vm1, %v1369_v24  ;;  %2415 = vmatpush3.msra.mxu1 %v1889_v18  ;;  %v1883_v24 = vld [vmem:[%s2915_s15 + $0x20] sm:$0xff] }
 0x3c0   : > { %2373 = vmatpush3.msk.msra.mxu0 %vm1023_vm4, %v1365_v22  ;;  %2416 = vmatprep.subr.mxu1 %v1888_v19  ;;  %v1885_v22 = vld [vmem:[%s2915_s15 + $0x30] sm:$0xff] }
 0x3c1   : > { %2374 = vmatprep.subr.mxu0 %v1360_v25  ;;  %2417 = vmatpush3.msra.mxu1 %v1888_v19 }
 0x3c2   : > { %2375 = vmatpush3.msra.mxu0 %v1360_v25  ;;  %2418 = vmatprep.subr.mxu1 %v1887_v20 }
 0x3c3   : > { %2379 = vmatprep.subr.mxu0 %v2181_v40  ;;  %2419 = vmatpush3.msra.mxu1 %v1887_v20 }
 0x3c4   : > { %2420 = vmatprep.subr.mxu1 %v1886_v21 }
 0x3c5   : > { %2421 = vmatpush3.msra.mxu1 %v1886_v21 }
 0x3c6   : > { %2422 = vmatprep.subr.mxu1 %v1885_v22 }
 0x3c7   : > { %2423 = vmatpush3.msra.mxu1 %v1885_v22 }
 0x3c8   : > { %2424 = vmatprep.subr.mxu1 %v1884_v23 }
 0x3c9   : > { %2425 = vmatpush3.msra.mxu1 %v1884_v23 }
 0x3ca   : > { %2426 = vmatprep.subr.mxu1 %v1883_v24 }
 0x3cb   : > { %2427 = vmatpush3.msra.mxu1 %v1883_v24 }
 0x470   : > { %v2392_v50 = vpop.f32.mrf.mxu1 }
 0x472   : > { %v1719_v54 = vpop.f32.mrf.mxu1 }
 0x47f   : > { %v2371_v26 = vpop.f32.mrf.mxu0 }
 0x480   : > { %v1460_v27 = vsel %vm997_vm3, %v2371_v26, -inf }
 0x481   : > { %1461 = vmax.xlane.f32.xlu1 %v1460_v27  ;;  %v1448_v28 = vpop.f32.mrf.mxu0 }
 0x482   : > { %v1457_v29 = vsel %vm993_vm2, %v1448_v28, -inf }
 0x483   : > { %1458 = vmax.xlane.f32.xlu0 %v1457_v29 }
 0x50a   : > { %v1462_v30 = vpop.xlane.xlu1 %1461 }
 0x50b   : > { %v1464_v31 = vsub.f32 %v2371_v26, %v1462_v30 }
 0x50c   : > { %v1459_v32 = vpop.xlane.xlu0 %1458 }
 0x50d   : > { %v1467_v33 = vmul.f32 1.442695, %v1464_v31  ;;  %v1463_v34 = vsub.f32 %v1448_v28, %v1459_v32  ;;  %v2187_v32 = vld [vmem:[%s2911_s11] ss:$0 sm:$0xff] }
 0x50f   : > { %2455 = vpow2.f32 %v1467_v33  ;;  %v1465_v35 = vmul.f32 1.442695, %v1463_v34 }
 0x511   : > { %2457 = vpow2.f32 %v1465_v35 }
 0x51c   : > { %v2456_v36 = vpop.eup %2455 }
 0x51d   : > { %v1472_v37 = vsel %vm997_vm3, %v2456_v36, 0.0 }
 0x51e   : > { %v2458_v38 = vpop.eup %2457  ;;  %1473 = vadd.xlane.f32.xlu1 %v1472_v37  ;;  %v2188_v37 = vld [vmem:[%s2912_s12] ss:$0 sm:$0xff] }
 0x51f   : > { %v1469_v39 = vsel %vm993_vm2, %v2458_v38, 0.0 }
 0x520   : > { %1470 = vadd.xlane.f32.xlu0 %v1469_v39 }
 0x5a7   : > { %v1474_v41 = vpop.xlane.xlu1 %1473 }
 0x5a8   : > { %2459 = vrcp.f32 %v1474_v41  ;;  %v1882_v41 = vld [vmem:[%s2915_s15 + $0x18] sm:$0xff] }
 0x5a9   : > { %v1471_v42 = vpop.xlane.xlu0 %1470  ;;  %2428 = vmatprep.subr.mxu1 %v1882_v41 }
 0x5aa   : > { %2461 = vrcp.f32 %v1471_v42  ;;  %2429 = vmatpush3.msra.mxu1 %v1882_v41  ;;  %v1881_v42 = vld [vmem:[%s2915_s15 + $0x10] sm:$0xff] }
 0x5ab   : > { %2430 = vmatprep.subr.mxu1 %v1881_v42 }
 0x5ac   : > { %2431 = vmatpush3.msra.mxu1 %v1881_v42  ;;  %v2195_v42 = vld [vmem:[%s2919_s19] ss:$0 sm:$0xff] }
 0x5b5   : > { %v2460_v43 = vpop.eup %2459 }
 0x5b6   : > { %v1478_v46 = vmul.f32 %v2460_v43, %v2456_v36  ;;  %v1880_v43 = vld [vmem:[%s2915_s15 + $0x8] sm:$0xff] }
 0x5b7   : > { %v2462_v44 = vpop.eup %2461  ;;  %2432 = vmatprep.subr.mxu1 %v1880_v43 }
 0x5b8   : > { %v1476_v45 = vmul.f32 %v2462_v44, %v2458_v38  ;;  %2433 = vmatpush3.msra.mxu1 %v1880_v43  ;;  %v1879_v44 = vld [vmem:[%s2915_s15] sm:$0xff] }
 0x5b9   : > { %2434 = vmatprep.subr.mxu1 %v1879_v44 }
 0x5ba   : > { %2376 = vmatprep.mubr.msk.f32.mxu0 %vm993_vm2, %v1476_v45  ;;  %2435 = vmatpush3.msra.mxu1 %v1879_v44  ;;  %v2189_v45 = vld [vmem:[%s2914_s14] ss:$0 sm:$0xff] }
 0x5bb   : > { %2377 = vmatmul.mubr.msk.f32.vlgmr.msra.gmra.mxu0 %vm993_vm2, %v1478_v46 }
 0x5bc   : > { %2380 = vmatpush3.msra.mxu0 %v2181_v40 }
 0x5bd   : > { %2381 = vmatprep.subr.mxu0 %v2180_v47 }
 0x5be   : > { %2382 = vmatpush3.msra.mxu0 %v2180_v47 }
 0x5bf   : > { %2393 = vmatprep.subr.mxu0 %v1788_v7 }
 0x67b   : > { %v2378_v48 = vpop.f32.mrf.mxu0 }
 0x67d   : > { %v1554_v49 = vpop.f32.mrf.mxu0 }
 0x67e   : > { %2383 = vmatprep.mubr.msk.f32.mxu0 %vm905_vm1, %v1554_v49 }
 0x67f   : > { %2384 = vmatmul.mubr.msk.f32.vlgmr.msra.gmra.mxu0 %vm905_vm1, %v2378_v48 }
 0x680   : > { %2394 = vmatpush3.msra.mxu0 %v1788_v7 }
 0x681   : > { %2395 = vmatprep.subr.mxu0 %v1787_v8 }
 0x682   : > { %2396 = vmatpush3.msra.mxu0 %v1787_v8 }
 0x683   : > { %2397 = vmatprep.subr.mxu0 %v1786_v11 }
 0x684   : > { %2398 = vmatpush3.msra.mxu0 %v1786_v11 }
 0x685   : > { %2399 = vmatprep.subr.mxu0 %v1785_v12 }
 0x686   : > { %2400 = vmatpush3.msra.mxu0 %v1785_v12 }
 0x73f   : > { %v2385_v51 = vpop.f32.mrf.mxu0 }
 0x740   : > { %v1725_v53 = vadd.f32 %v2392_v50, %v2385_v51 }
 0x741   : > { %v1638_v55 = vpop.f32.mrf.mxu0 }
 0x742   : > { %v1736_v56 = vadd.f32 %v2186_v52, %v1725_v53  ;;  %v1720_v57 = vadd.f32 %v1719_v54, %v1638_v55 }
 0x744   : > { %v1735_v58 = vadd.f32 %v2186_v52, %v1720_v57  ;;  %v1738_v59 = vadd.f32 %v1736_v56, %v2632_v10  ;;  %v2192_v52 = vld [vmem:[%s2916_s16] ss:$0 sm:$0xff] }
 0x746   : > { %v1745_v60 = vsel %vm1744_vm5, %v1738_v59, 0.0  ;;  %v1737_v61 = vadd.f32 %v1735_v58, %v2630_v9 }
 0x747   : > { %1746 = vadd.xlane.f32.xlu1 %v1745_v60 }
 0x748   : > { %v1741_v62 = vsel %vm649_vm0, %v1737_v61, 0.0 }
 0x749   : > { %1742 = vadd.xlane.f32.xlu0 %v1741_v62 }
 0x7d0   : > { %v1747_v63 = vpop.xlane.xlu1 %1746 }
 0x7d1   : > { %v1750_v0 = vmul.f32 0.03125, %v1747_v63 }
 0x7d2   : > { %v1743_v1 = vpop.xlane.xlu0 %1742 }
 0x7d3   : > { %v2784_v2 = vsub.f32 %v1738_v59, %v1750_v0  ;;  %v1749_v3 = vmul.f32 0.03125, %v1743_v1 }
 0x7d5   : > { %v2786_v4 = vsub.f32 %v1737_v61, %v1749_v3  ;;  %v1754_v5 = vmul.f32 %v2784_v2, %v2784_v2 }
 0x7d7   : > { %v1758_v10 = vsel %vm1744_vm5, %v1754_v5, 0.0  ;;  %v1753_v9 = vmul.f32 %v2786_v4, %v2786_v4 }
 0x7d8   : > { %1759 = vadd.xlane.f32.xlu1 %v1758_v10 }
 0x7d9   : > { %v1755_v6 = vsel %vm649_vm0, %v1753_v9, 0.0 }
 0x7da   : > { %1756 = vadd.xlane.f32.xlu0 %v1755_v6 }
 0x861   : > { %v1760_v25 = vpop.xlane.xlu1 %1759 }
 0x862   : > { %v1762_v26 = vmul.f32 0.03125, %v1760_v25 }
 0x863   : > { %v1757_v27 = vpop.xlane.xlu0 %1756 }
 0x864   : > { %v1764_v28 = vadd.f32 1e-05, %v1762_v26  ;;  %v1761_v29 = vmul.f32 0.03125, %v1757_v27 }
 0x866   : > { %2463 = vrsqrt.f32 %v1764_v28  ;;  %v1763_v30 = vadd.f32 1e-05, %v1761_v29 }
 0x868   : > { %2465 = vrsqrt.f32 %v1763_v30 }
 0x873   : > { %v2464_v31 = vpop.eup %2463 }
 0x874   : > { %v1768_v33 = vmul.f32 %v2464_v31, %v2784_v2 }
 0x875   : > { %v2466_v34 = vpop.eup %2465 }
 0x876   : > { %v1767_v35 = vmul.f32 %v2466_v34, %v2786_v4  ;;  %v1776_v36 = vmul.f32 %v2187_v32, %v1768_v33 }
 0x878   : > { %v1775_v38 = vmul.f32 %v2187_v32, %v1767_v35  ;;  %v1784_v40 = vadd.f32 %v2188_v37, %v1776_v36 }
 0x87a   : > { %v1783_v39 = vadd.f32 %v2188_v37, %v1775_v38 }
 0x87c   : > { %2401 = vmatprep.mubr.msk.f32.mxu0 %vm649_vm0, %v1783_v39 }
 0x87d   : > { %2402 = vmatmul.mubr.msk.f32.vlgmr.msra.gmra.mxu0 %vm649_vm0, %v1784_v40 }
 0x93d   : > { %v2403_v46 = vpop.f32.mrf.mxu0 }
 0x93e   : > { %v1874_v47 = vadd.f32 %v2403_v46, %v2189_v45 }
 0x93f   : > { %v1868_v48 = vpop.f32.mrf.mxu0 }
 0x940   : > { %v1869_v49 = vadd.f32 %v2189_v45, %v1868_v48  ;;  %v1878_v51 = vmax.f32 %v1874_v47, 0.0  ;;  %v2196_v45 = vld [vmem:[%s2920_s20] ss:$0 sm:$0xff] }
 0x942   : > { %v1877_v50 = vmax.f32 %v1869_v49, 0.0 }
 0x944   : > { %2436 = vmatprep.mubr.f32.mxu1 %v1877_v50 }
 0x945   : > { %2437 = vmatmul.mubr.f32.vlgmr.msra.gmra.mxu1 %v1878_v51 }
 0xa05   : > { %v2438_v53 = vpop.f32.mrf.mxu1 }
 0xa06   : > { %v1974_v54 = vadd.f32 %v2438_v53, %v2192_v52 }
 0xa07   : > { %v1968_v55 = vpop.f32.mrf.mxu1 }
 0xa08   : > { %v1969_v56 = vadd.f32 %v2192_v52, %v1968_v55  ;;  %v1978_v57 = vadd.f32 %v1974_v54, %v1784_v40 }
 0xa0a   : > { %v1984_v58 = vsel %vm1744_vm5, %v1978_v57, 0.0  ;;  %v1977_v59 = vadd.f32 %v1969_v56, %v1783_v39 }
 0xa0b   : > { %1985 = vadd.xlane.f32.xlu1 %v1984_v58 }
 0xa0c   : > { %v1981_v60 = vsel %vm649_vm0, %v1977_v59, 0.0 }
 0xa0d   : > { %1982 = vadd.xlane.f32.xlu0 %v1981_v60 }
 0xa94   : > { %v1986_v61 = vpop.xlane.xlu1 %1985 }
 0xa95   : > { %v1988_v62 = vmul.f32 0.03125, %v1986_v61 }
 0xa96   : > { %v1983_v63 = vpop.xlane.xlu0 %1982 }
 0xa97   : > { %v1990_v0 = vsub.f32 %v1978_v57, %v1988_v62  ;;  %v1987_v1 = vmul.f32 0.03125, %v1983_v63 }
 0xa99   : > { %v1989_v2 = vsub.f32 %v1977_v59, %v1987_v1  ;;  %v1992_v3 = vmul.f32 %v1990_v0, %v1990_v0 }
 0xa9b   : > { %v1996_v4 = vsel %vm1744_vm5, %v1992_v3, 0.0  ;;  %v1991_v5 = vmul.f32 %v1989_v2, %v1989_v2 }
 0xa9c   : > { %1997 = vadd.xlane.f32.xlu1 %v1996_v4 }
 0xa9d   : > { %v1993_v10 = vsel %vm649_vm0, %v1991_v5, 0.0 }
 0xa9e   : > { %1994 = vadd.xlane.f32.xlu0 %v1993_v10 }
 0xb25   : > { %v1998_v9 = vpop.xlane.xlu1 %1997 }
 0xb26   : > { %v2000_v6 = vmul.f32 0.03125, %v1998_v9 }
 0xb27   : > { %v1995_v7 = vpop.xlane.xlu0 %1994 }
 0xb28   : > { %v2002_v8 = vadd.f32 1e-05, %v2000_v6  ;;  %v1999_v11 = vmul.f32 0.03125, %v1995_v7 }
 0xb2a   : > { %2467 = vrsqrt.f32 %v2002_v8  ;;  %v2001_v12 = vadd.f32 1e-05, %v1999_v11 }
 0xb2c   : > { %2469 = vrsqrt.f32 %v2001_v12 }
 0xb37   : > { %v2468_v13 = vpop.eup %2467 }
 0xb38   : > { %v2006_v15 = vmul.f32 %v2468_v13, %v1990_v0 }
 0xb39   : > { %v2470_v16 = vpop.eup %2469 }
 0xb3a   : > { %v2014_v18 = vmul.f32 %v2193_v14, %v2006_v15  ;;  %v2005_v19 = vmul.f32 %v2470_v16, %v1989_v2 }
 0xb3c   : > { %v2022_v20 = vadd.f32 %v2194_v17, %v2014_v18  ;;  %v2013_v21 = vmul.f32 %v2193_v14, %v2005_v19 }
 0xb3e   : > { %v2028_v22 = vsel %vm1744_vm5, %v2022_v20, 0.0  ;;  %v2021_v23 = vadd.f32 %v2194_v17, %v2013_v21 }
 0xb3f   : > { %2029 = vadd.xlane.f32.xlu1 %v2028_v22 }
 0xb40   : > { %v2025_v24 = vsel %vm649_vm0, %v2021_v23, 0.0 }
 0xb41   : > { %2026 = vadd.xlane.f32.xlu0 %v2025_v24 }
 0xbc8   : > { %v2030_v25 = vpop.xlane.xlu1 %2029 }
 0xbc9   : > { %v2032_v26 = vmul.f32 0.03125, %v2030_v25 }
 0xbca   : > { %v2027_v27 = vpop.xlane.xlu0 %2026 }
 0xbcb   : > { %v2034_v28 = vsub.f32 %v2022_v20, %v2032_v26  ;;  %v2031_v29 = vmul.f32 0.03125, %v2027_v27 }
 0xbcd   : > { %v2033_v30 = vsub.f32 %v2021_v23, %v2031_v29  ;;  %v2036_v31 = vmul.f32 %v2034_v28, %v2034_v28 }
 0xbcf   : > { %v2040_v32 = vsel %vm1744_vm5, %v2036_v31, 0.0  ;;  %v2035_v33 = vmul.f32 %v2033_v30, %v2033_v30 }
 0xbd0   : > { %2041 = vadd.xlane.f32.xlu1 %v2040_v32 }
 0xbd1   : > { %v2037_v34 = vsel %vm649_vm0, %v2035_v33, 0.0 }
 0xbd2   : > { %2038 = vadd.xlane.f32.xlu0 %v2037_v34 }
 0xc59   : > { %v2042_v35 = vpop.xlane.xlu1 %2041 }
 0xc5a   : > { %v2044_v36 = vmul.f32 0.03125, %v2042_v35 }
 0xc5b   : > { %v2039_v37 = vpop.xlane.xlu0 %2038 }
 0xc5c   : > { %v2046_v38 = vadd.f32 1e-05, %v2044_v36  ;;  %v2043_v39 = vmul.f32 0.03125, %v2039_v37 }
 0xc5e   : > { %2471 = vrsqrt.f32 %v2046_v38  ;;  %v2045_v40 = vadd.f32 1e-05, %v2043_v39 }
 0xc60   : > { %2473 = vrsqrt.f32 %v2045_v40 }
 0xc6b   : > { %v2472_v41 = vpop.eup %2471 }
 0xc6c   : > { %v2050_v43 = vmul.f32 %v2472_v41, %v2034_v28 }
 0xc6d   : > { %v2474_v44 = vpop.eup %2473 }
 0xc6e   : > { %v2058_v46 = vmul.f32 %v2195_v42, %v2050_v43  ;;  %v2049_v47 = vmul.f32 %v2474_v44, %v2033_v30 }
 0xc70   : > { %v2066_v48 = vadd.f32 %v2196_v45, %v2058_v46  ;;  %v2057_v49 = vmul.f32 %v2195_v42, %v2049_v47 }
 0xc72   : > { %2068 = vst.msk [vmem:[%s631_s5 + $0x8] sm:$0x1] %vm1744_vm5, %v2066_v48  ;;  %v2065_v50 = vadd.f32 %v2196_v45, %v2057_v49 }
 0xc74   : > { %2067 = vst.msk [vmem:[%s631_s5] sm:$0xff] %vm649_vm0, %v2065_v50 }
 0xc75 PF: > { %s2941_s23 = sld [smem:[#allocation4_spill]] }
 0xc7b   : > { %s32_s2 = sadd.s32 1, %s2941_s23  }
 0xc7c   : > { %p29_p4 = scmp.ge.s32.totalorder %s32_s2, 4  }
 0xc7e   :  { %31 = sbr.rel (!%p29_p4) target bundleno = 7 (0x7), region = 137 }

</bundles_post_ra>
